<compile_context>
chip_gen: v5e
topology: v5e:2x2
jax: 0.10.0
libtpu: 0.0.40
codegen_flags: <defaults>
</compile_context>

<pallas_src>
import jax
import jax.numpy as jnp
from jax.experimental import pallas as pl
from jax.experimental.pallas import tpu as pltpu


def hypergraph2_kernel(x_ref, h_ref, ht_ref, w1_ref, b1_ref, w2_ref, b2_ref, out_ref):
    h = h_ref[...]     # (N, E) bf16, exact 0/1
    ht = ht_ref[...]   # (E, N) bf16, pre-transposed in the wrapper

    # Degrees accumulated directly into f32 (no persistent f32 copy of H, no bf16 h_left).
    deg_n = jnp.sum(h, axis=1, keepdims=True, dtype=jnp.float32)    # (N, 1)
    deg_e = jnp.sum(ht, axis=1, keepdims=True, dtype=jnp.float32)   # (E, 1)
    d_inv = jnp.where(deg_n > 0.0, 1.0 / deg_n, 0.0)                # f32, masks padded nodes
    b_inv = jnp.where(deg_e > 0.0, 1.0 / deg_e, 0.0)                # f32, masks padded edges

    def hgconv(xin_bf16, w_bf16, bias_f32):
        # X @ Theta  (bf16 MXU operands, f32 accumulation)
        z = jnp.dot(xin_bf16, w_bf16, preferred_element_type=jnp.float32)            # (N, Fo)
        # H^T @ z  (MXU-native orientation via pre-transposed H^T)
        m = jnp.dot(ht, z.astype(jnp.bfloat16), preferred_element_type=jnp.float32)  # (E, Fo)
        m = m * b_inv                                   # B^{-1}: small f32 per-row scaling
        # H @ (B^{-1} m)
        o = jnp.dot(h, m.astype(jnp.bfloat16), preferred_element_type=jnp.float32)   # (N, Fo)
        return o * d_inv + bias_f32                     # D^{-1} scaling + bias, all f32

    # Layer 1 + ReLU (f32)
    x1 = jnp.maximum(hgconv(x_ref[...], w1_ref[...], b1_ref[...]), 0.0)
    # Dropout: module evaluated in inference mode -> identity.
    # TODO(synk): training-mode dropout would use pltpu.prng_seed / pltpu.prng_random_bits.
    # Layer 2
    out_ref[...] = hgconv(x1.astype(jnp.bfloat16), w2_ref[...], b2_ref[...]).astype(out_ref.dtype)


def _pad_to(a, axis, mult):
    size = a.shape[axis]
    target = -(-size // mult) * mult
    if target == size:
        return a
    pad = [(0, 0)] * a.ndim
    pad[axis] = (0, target - size)
    return jnp.pad(a, pad)


def hypergraph2_forward(x, adj, w1, b1, w2, b2):
    N, _ = x.shape
    nclass = w2.shape[1]

    LANE = 128  # lane density target; also a multiple of bf16's 16-row sublane packing

    # Zero padding: padded hyperedge columns get deg_e = 0 (masked by b_inv); padded node
    # rows get d_inv = 0 and are sliced off below; padded feature/class columns stay zero.
    x_p = _pad_to(_pad_to(x.astype(jnp.bfloat16), 1, LANE), 0, LANE)    # (Np, Fp)
    h_p = _pad_to(_pad_to(adj.astype(jnp.bfloat16), 1, LANE), 0, LANE)  # (Np, Ep)
    ht_p = h_p.T                                                        # (Ep, Np) one-time wrapper transpose
    w1_p = _pad_to(_pad_to(w1.astype(jnp.bfloat16), 0, LANE), 1, LANE)  # (Fp, Hp)
    w2_p = _pad_to(_pad_to(w2.astype(jnp.bfloat16), 0, LANE), 1, LANE)  # (Hp, Cp)
    b1_p = _pad_to(b1.astype(jnp.float32), 1, LANE)                     # (1, Hp)
    b2_p = _pad_to(b2.astype(jnp.float32), 1, LANE)                     # (1, Cp)

    Np, Fp = x_p.shape
    Ep = h_p.shape[1]
    Hp = w1_p.shape[1]
    Cp = w2_p.shape[1]

    # Advisory cost hint so XLA's scheduler can overlap the custom call with neighbours.
    flops = 2 * (Np * Fp * Hp + 2 * Np * Ep * Hp) + 2 * (Np * Hp * Cp + 2 * Np * Ep * Cp)
    bytes_accessed = sum(int(a.size * a.dtype.itemsize)
                         for a in (x_p, h_p, ht_p, w1_p, b1_p, w2_p, b2_p))
    bytes_accessed += int(Np * Cp * 4)
    cost = pl.CostEstimate(flops=flops, transcendentals=0, bytes_accessed=bytes_accessed)

    # Derive the VMEM limit from the actual chip (64 MiB/TC on v7x vs 128 MiB on v5e/v6e),
    # leaving headroom for double-buffered DMAs / internal scratch instead of claiming all of it.
    try:
        vmem_cap = pltpu.get_tpu_info().vmem_capacity_bytes
        compiler_params = pltpu.CompilerParams(vmem_limit_bytes=int(vmem_cap * 3 // 4))
    except Exception:  # keep robust if the query is unavailable; defaults are ample here
        compiler_params = None

    vmem = pl.BlockSpec(memory_space=pltpu.MemorySpace.VMEM)
    out_padded = pl.pallas_call(
        hypergraph2_kernel,
        out_shape=jax.ShapeDtypeStruct((Np, Cp), jnp.float32),
        in_specs=[vmem] * 7,
        out_specs=vmem,
        cost_estimate=cost,
        compiler_params=compiler_params,
    )(x_p, h_p, ht_p, w1_p, b1_p, w2_p, b2_p)

    return out_padded[:N, :nclass]


def reference_forward(x, adj, w1, b1, w2, b2):
    h = adj.astype(jnp.float32)
    deg_n = h.sum(axis=1, keepdims=True)
    deg_e = h.sum(axis=0, keepdims=True)
    d_inv = jnp.where(deg_n > 0, 1.0 / deg_n, 0.0)
    b_inv = jnp.where(deg_e > 0, 1.0 / deg_e, 0.0)

    def conv(xin, w, b):
        z = xin @ w
        m = (h.T @ z) * b_inv.T
        return (h @ m) * d_inv + b

    x0 = jnp.maximum(conv(x, w1, b1), 0.0)
    return conv(x0, w2, b2)


if __name__ == "__main__":
    # Small, deterministic shapes implied by the module:
    N = 16        # num nodes
    E = 8         # num hyperedges
    nfeat = 32
    nhid = 32
    nclass = 8

    key = jax.random.PRNGKey(0)
    kx, kh, kw1, kw2 = jax.random.split(key, 4)

    x = jax.random.normal(kx, (N, nfeat), dtype=jnp.float32)
    # Dense 0/1 incidence matrix H (N x E)
    adj = (jax.random.uniform(kh, (N, E)) < 0.35).astype(jnp.float32)

    # Deterministic Glorot-style parameter init (HypergraphConv: Linear(nfeat->nhid), bias)
    s1 = (6.0 / (nfeat + nhid)) ** 0.5
    s2 = (6.0 / (nhid + nclass)) ** 0.5
    w1 = jax.random.uniform(kw1, (nfeat, nhid), minval=-s1, maxval=s1, dtype=jnp.float32)
    b1 = jnp.zeros((1, nhid), dtype=jnp.float32)
    w2 = jax.random.uniform(kw2, (nhid, nclass), minval=-s2, maxval=s2, dtype=jnp.float32)
    b2 = jnp.zeros((1, nclass), dtype=jnp.float32)

    out = hypergraph2_forward(x, adj, w1, b1, w2, b2)
    out = jax.block_until_ready(out)

    ref = reference_forward(x, adj, w1, b1, w2, b2)
    assert out.shape == (N, nclass)
    # bf16 MXU operands with f32 accumulation; normalizers/bias/ReLU all in f32 now, so the
    # tolerance is tightened vs the previous (bf16 h_left) version.
    assert jnp.allclose(out, ref, atol=3e-2, rtol=3e-2)

    print("KERNEL_OK")
</pallas_src>

<mosaic_0001>
module attributes {stable_mosaic.version = 11 : i64} {
  func.func @hypergraph2_kernel(%arg0: memref<128x128xbf16, #tpu.memory_space<vmem>>, %arg1: memref<128x128xbf16, #tpu.memory_space<vmem>>, %arg2: memref<128x128xbf16, #tpu.memory_space<vmem>>, %arg3: memref<128x128xbf16, #tpu.memory_space<vmem>>, %arg4: memref<1x128xf32, #tpu.memory_space<vmem>>, %arg5: memref<128x128xbf16, #tpu.memory_space<vmem>>, %arg6: memref<1x128xf32, #tpu.memory_space<vmem>>, %arg7: memref<128x128xf32, #tpu.memory_space<vmem>>) attributes {dimension_semantics = [], scalar_prefetch = 0 : i64, scratch_operands = 0 : i64, tpu.core_type = #tpu.core_type<tc>} {
    %c0 = arith.constant 0 : index
    %c0_0 = arith.constant 0 : index
    %0 = vector.load %arg1[%c0, %c0_0] : memref<128x128xbf16, #tpu.memory_space<vmem>>, vector<128x128xbf16>
    %c0_1 = arith.constant 0 : index
    %c0_2 = arith.constant 0 : index
    %1 = vector.load %arg2[%c0_1, %c0_2] : memref<128x128xbf16, #tpu.memory_space<vmem>>, vector<128x128xbf16>
    %2 = arith.extf %0 : vector<128x128xbf16> to vector<128x128xf32>
    %cst = arith.constant dense<0.000000e+00> : vector<128xf32>
    %3 = vector.multi_reduction <add>, %2, %cst [1] : vector<128x128xf32> to vector<128xf32>
    %4 = vector.shape_cast %3 : vector<128xf32> to vector<128x1xf32>
    %5 = arith.extf %1 : vector<128x128xbf16> to vector<128x128xf32>
    %cst_3 = arith.constant dense<0.000000e+00> : vector<128xf32>
    %6 = vector.multi_reduction <add>, %5, %cst_3 [1] : vector<128x128xf32> to vector<128xf32>
    %7 = vector.shape_cast %6 : vector<128xf32> to vector<128x1xf32>
    %cst_4 = arith.constant 0.000000e+00 : f32
    %8 = vector.broadcast %cst_4 : f32 to vector<128x1xf32>
    %9 = arith.cmpf ogt, %4, %8 : vector<128x1xf32>
    %cst_5 = arith.constant 1.000000e+00 : f32
    %10 = vector.broadcast %cst_5 : f32 to vector<128x1xf32>
    %11 = arith.divf %10, %4 : vector<128x1xf32>
    %cst_6 = arith.constant 0.000000e+00 : f32
    %12 = vector.broadcast %cst_6 : f32 to vector<128x1xf32>
    %13 = arith.select %9, %11, %12 : vector<128x1xi1>, vector<128x1xf32>
    %cst_7 = arith.constant 0.000000e+00 : f32
    %14 = vector.broadcast %cst_7 : f32 to vector<128x1xf32>
    %15 = arith.cmpf ogt, %7, %14 : vector<128x1xf32>
    %cst_8 = arith.constant 1.000000e+00 : f32
    %16 = vector.broadcast %cst_8 : f32 to vector<128x1xf32>
    %17 = arith.divf %16, %7 : vector<128x1xf32>
    %cst_9 = arith.constant 0.000000e+00 : f32
    %18 = vector.broadcast %cst_9 : f32 to vector<128x1xf32>
    %19 = arith.select %15, %17, %18 : vector<128x1xi1>, vector<128x1xf32>
    %c0_10 = arith.constant 0 : index
    %c0_11 = arith.constant 0 : index
    %20 = vector.load %arg0[%c0_10, %c0_11] : memref<128x128xbf16, #tpu.memory_space<vmem>>, vector<128x128xbf16>
    %c0_12 = arith.constant 0 : index
    %c0_13 = arith.constant 0 : index
    %21 = vector.load %arg3[%c0_12, %c0_13] : memref<128x128xbf16, #tpu.memory_space<vmem>>, vector<128x128xbf16>
    %c0_14 = arith.constant 0 : index
    %c0_15 = arith.constant 0 : index
    %22 = vector.load %arg4[%c0_14, %c0_15] : memref<1x128xf32, #tpu.memory_space<vmem>>, vector<1x128xf32>
    %cst_16 = arith.constant dense<0.000000e+00> : vector<128x128xf32>
    %23 = tpu.matmul %20, %21, %cst_16 {dimension_numbers = #tpu.dot_dimension_numbers<[1], [0], [0], [1], [0, 0, 1, 1], [], []>} : vector<128x128xbf16>, vector<128x128xbf16>, vector<128x128xf32> -> vector<128x128xf32>
    %24 = arith.truncf %23 : vector<128x128xf32> to vector<128x128xbf16>
    %cst_17 = arith.constant dense<0.000000e+00> : vector<128x128xf32>
    %25 = tpu.matmul %1, %24, %cst_17 {dimension_numbers = #tpu.dot_dimension_numbers<[1], [0], [0], [1], [0, 0, 1, 1], [], []>} : vector<128x128xbf16>, vector<128x128xbf16>, vector<128x128xf32> -> vector<128x128xf32>
    %26 = vector.broadcast %19 : vector<128x1xf32> to vector<128x128xf32>
    %27 = arith.mulf %25, %26 : vector<128x128xf32>
    %28 = arith.truncf %27 : vector<128x128xf32> to vector<128x128xbf16>
    %cst_18 = arith.constant dense<0.000000e+00> : vector<128x128xf32>
    %29 = tpu.matmul %0, %28, %cst_18 {dimension_numbers = #tpu.dot_dimension_numbers<[1], [0], [0], [1], [0, 0, 1, 1], [], []>} : vector<128x128xbf16>, vector<128x128xbf16>, vector<128x128xf32> -> vector<128x128xf32>
    %30 = vector.broadcast %13 : vector<128x1xf32> to vector<128x128xf32>
    %31 = arith.mulf %29, %30 : vector<128x128xf32>
    %32 = vector.broadcast %22 : vector<1x128xf32> to vector<128x128xf32>
    %33 = arith.addf %31, %32 : vector<128x128xf32>
    %cst_19 = arith.constant 0.000000e+00 : f32
    %34 = vector.broadcast %cst_19 : f32 to vector<128x128xf32>
    %35 = arith.maximumf %33, %34 : vector<128x128xf32>
    %36 = arith.truncf %35 : vector<128x128xf32> to vector<128x128xbf16>
    %c0_20 = arith.constant 0 : index
    %c0_21 = arith.constant 0 : index
    %37 = vector.load %arg5[%c0_20, %c0_21] : memref<128x128xbf16, #tpu.memory_space<vmem>>, vector<128x128xbf16>
    %c0_22 = arith.constant 0 : index
    %c0_23 = arith.constant 0 : index
    %38 = vector.load %arg6[%c0_22, %c0_23] : memref<1x128xf32, #tpu.memory_space<vmem>>, vector<1x128xf32>
    %cst_24 = arith.constant dense<0.000000e+00> : vector<128x128xf32>
    %39 = tpu.matmul %36, %37, %cst_24 {dimension_numbers = #tpu.dot_dimension_numbers<[1], [0], [0], [1], [0, 0, 1, 1], [], []>} : vector<128x128xbf16>, vector<128x128xbf16>, vector<128x128xf32> -> vector<128x128xf32>
    %40 = arith.truncf %39 : vector<128x128xf32> to vector<128x128xbf16>
    %cst_25 = arith.constant dense<0.000000e+00> : vector<128x128xf32>
    %41 = tpu.matmul %1, %40, %cst_25 {dimension_numbers = #tpu.dot_dimension_numbers<[1], [0], [0], [1], [0, 0, 1, 1], [], []>} : vector<128x128xbf16>, vector<128x128xbf16>, vector<128x128xf32> -> vector<128x128xf32>
    %42 = vector.broadcast %19 : vector<128x1xf32> to vector<128x128xf32>
    %43 = arith.mulf %41, %42 : vector<128x128xf32>
    %44 = arith.truncf %43 : vector<128x128xf32> to vector<128x128xbf16>
    %cst_26 = arith.constant dense<0.000000e+00> : vector<128x128xf32>
    %45 = tpu.matmul %0, %44, %cst_26 {dimension_numbers = #tpu.dot_dimension_numbers<[1], [0], [0], [1], [0, 0, 1, 1], [], []>} : vector<128x128xbf16>, vector<128x128xbf16>, vector<128x128xf32> -> vector<128x128xf32>
    %46 = vector.broadcast %13 : vector<128x1xf32> to vector<128x128xf32>
    %47 = arith.mulf %45, %46 : vector<128x128xf32>
    %48 = vector.broadcast %38 : vector<1x128xf32> to vector<128x128xf32>
    %49 = arith.addf %47, %48 : vector<128x128xf32>
    %c0_27 = arith.constant 0 : index
    %c0_28 = arith.constant 0 : index
    %50 = vector.load %arg7[%c0_27, %c0_28] : memref<128x128xf32, #tpu.memory_space<vmem>>, vector<128x128xf32>
    tpu.vector_store %arg7[%c0_27, %c0_28], %49 {strides = array<i32>} : memref<128x128xf32, #tpu.memory_space<vmem>>, vector<128x128xf32>,
    return
  }
}

</mosaic_0001>

<bundles_post_ra>
// kernel: tpu_custom_call.1
= control target key start
LH: loop header
LB: loop body
LE: loop exit
PB: predicated region body
PF: predicated region fallthrough
CT: control target
= control target key end

     0   :  { %12 = vsyncpa [#allocation3], 0  ;;  %s3119_s0 = inlined_call_operand.hbm [shape: bf16[128,128], index: 0, kind: input, shape index: {}]   ;;  %s3120_s1 = inlined_call_operand.hbm [shape: bf16[128,128], index: 1, kind: input, shape index: {}]   ;;  %s3121_s2 = inlined_call_operand.hbm [shape: bf16[128,128], index: 2, kind: input, shape index: {}]   ;;  %s3122_s3 = inlined_call_operand.hbm [shape: bf16[128,128], index: 3, kind: input, shape index: {}]   ;;  %s3123_s4 = inlined_call_operand.vmem [shape: f32[1,128], index: 4, kind: input, shape index: {}]   ;;  %s3124_s5 = inlined_call_operand.hbm [shape: bf16[128,128], index: 5, kind: input, shape index: {}]   ;;  %s3125_s6 = inlined_call_operand.vmem [shape: f32[1,128], index: 6, kind: input, shape index: {}]   ;;  %s3126_s7 = inlined_call_operand.hbm [shape: f32[128,128], index: 7, kind: output, shape index: {}]  }
   0x1   :  { %13 = vsyncpa [#allocation6], 0 }
   0x2   :  { %14 = vsyncpa [#allocation9], 0 }
   0x3   :  { %15 = vsyncpa [#allocation4], 0  ;;  %s33_s26 = sshll.u32 %s3120_s1, 4  ;;  %s2009_s27 = smov [#allocation5]   ;;  %s34_s26 = int_to_ptr.hbm [resolvable:$true] %s33_s26 }
   0x4   :  { %s35_s28 = sshll.u32 %s2009_s27, 4  ;;  %s59_s8 = sshll.u32 %s3122_s3, 4  ;;  %s36_s28 = int_to_ptr.vmem [resolvable:$true] %s35_s28  ;;  %s60_s8 = int_to_ptr.hbm [resolvable:$true] %s59_s8 }
   0x5   :  { %s2010_s9 = smov 64   ;;  %s2011_s10 = smov 4  }
   0x6   :  { %41 = dma.hbm_to_vmem [thread:$0]  %s34_s26, 1024, %s36_s28, [#allocation6], %s2010_s9, %s2010_s9, %s2011_s10  }
   0x7   :  { %s2012_s11 = smov [#allocation8]   ;;  %s20_s15 = sshll.u32 %s3119_s0, 4  ;;  %s21_s15 = int_to_ptr.hbm [resolvable:$true] %s20_s15 }
   0x8   :  { %s61_s12 = sshll.u32 %s2012_s11, 4  ;;  %s46_s17 = sshll.u32 %s3121_s2, 4  ;;  %s62_s12 = int_to_ptr.vmem [resolvable:$true] %s61_s12  ;;  %s47_s17 = int_to_ptr.hbm [resolvable:$true] %s46_s17 }
   0x9   :  { %67 = dma.hbm_to_vmem [thread:$0]  %s60_s8, 1024, %s62_s12, [#allocation9], %s2010_s9, %s2010_s9, %s2011_s10  }
   0xa   :  { %s2013_s18 = smov [#allocation2]   ;;  %s2014_s3 = smov [#allocation7]  }
   0xb   :  { %s22_s19 = sshll.u32 %s2013_s18, 4  ;;  %s48_s20 = sshll.u32 %s2014_s3, 4  ;;  %s23_s19 = int_to_ptr.vmem [resolvable:$true] %s22_s19  ;;  %s49_s20 = int_to_ptr.vmem [resolvable:$true] %s48_s20 }
   0xc   :  { %28 = dma.hbm_to_vmem [thread:$0]  %s21_s15, 1024, %s23_s19, [#allocation3], %s2010_s9, %s2010_s9, %s2011_s10  }
   0xd   :  { %s74_s23 = sshll.u32 %s3124_s5, 4  ;;  %s2015_s0 = smov [#allocation10]   ;;  %s75_s23 = int_to_ptr.hbm [resolvable:$true] %s74_s23 }
   0xe   :  { %54 = dma.hbm_to_vmem [thread:$0]  %s47_s17, 1024, %s49_s20, [#allocation6], %s2010_s9, %s2010_s9, %s2011_s10  }
   0xf   :  { %s76_s24 = sshll.u32 %s2015_s0, 4  ;;  %s77_s24 = int_to_ptr.vmem [resolvable:$true] %s76_s24 }
  0x10   :  { %82 = dma.hbm_to_vmem [thread:$0]  %s75_s23, 1024, %s77_s24, [#allocation9], %s2010_s9, %s2010_s9, %s2011_s10  }
  0x11   :  { %2001 = dma.done.wait [#allocation3], 1024  }
  0x12   :  { %2002 = vsyncadd [#allocation3], 4294966272 }
  0x13   :  { %2003 = dma.done.wait [#allocation6], 2048  }
  0x14   :  { %2004 = vsyncadd [#allocation6], 4294965248 }
  0x15   :  { %2005 = dma.done.wait [#allocation9], 2048  }
  0x16   :  { %2006 = vsyncadd [#allocation9], 4294965248  ;;  %v1747_v0 = vld [vmem:[#allocation8 + $0x38] sm:$0xff]  ;;  %v1746_v1 = vld [vmem:[#allocation8 + $0x30] sm:$0xff]  ;;  %s1541_s29 = sshll.u32 %s3126_s7, 4  ;;  %s2017_s30 = smov 128   ;;  %s1542_s29 = int_to_ptr.hbm [resolvable:$true] %s1541_s29 }
  0x17   :  { %1756 = vmatpush.bf16.msra.mxu2 %v1747_v0  ;;  %906 = vmatpush.bf16.msra.mxu0 %v1747_v0  ;;  %v1745_v2 = vld [vmem:[#allocation8 + $0x28] sm:$0xff]  ;;  %v1744_v3 = vld [vmem:[#allocation8 + $0x20] sm:$0xff]  ;;  %v1743_v4 = vld [vmem:[#allocation8 + $0x18] sm:$0xff]  ;;  %s2018_s8 = smov 8  }
  0x18   :  { %v1742_v5 = vld [vmem:[#allocation8 + $0x10] sm:$0xff]  ;;  %v1741_v6 = vld [vmem:[#allocation8 + $0x8] sm:$0xff]  ;;  %v1740_v7 = vld [vmem:[#allocation8] sm:$0xff] }
  0x19   :  { %v1736_v8 = vld [vmem:[#allocation2 + $0x20] sm:$0xff]  ;;  %v1737_v10 = vld [vmem:[#allocation2 + $0x28] sm:$0xff]  ;;  %v1738_v12 = vld [vmem:[#allocation2 + $0x30] sm:$0xff] }
  0x1a   :  { %v1732_v9 = vld [vmem:[#allocation2] sm:$0xff]  ;;  %v1733_v11 = vld [vmem:[#allocation2 + $0x8] sm:$0xff]  ;;  %v1734_v13 = vld [vmem:[#allocation2 + $0x10] sm:$0xff] }
  0x1b   :  { %1757 = vmatpush.bf16.msra.mxu2 %v1746_v1  ;;  %907 = vmatpush.bf16.msra.mxu0 %v1746_v1  ;;  %v1739_v14 = vld [vmem:[#allocation2 + $0x38] sm:$0xff]  ;;  %v131_v27 = vld [vmem:[#allocation7 + $0x28] sm:$0xff]   ;;  %v133_v32 = vld [vmem:[#allocation7 + $0x30] sm:$0xff]  }
  0x1c   :  { %v1735_v15 = vld [vmem:[#allocation2 + $0x18] sm:$0xff]  ;;  %v195_v29 = vunpack.c.l.bf16 %v131_v27  ;;  %v129_v33 = vld [vmem:[#allocation7 + $0x20] sm:$0xff]   ;;  %v197_v34 = vunpack.c.l.bf16 %v133_v32  ;;  %v196_v35 = vunpack.c.h.bf16 %v131_v27  ;;  %v198_v40 = vunpack.c.h.bf16 %v133_v32  ;;  %v126_v45 = vld [vmem:[#allocation7 + $0x10] sm:$0xff]  }
  0x1d   :  { %v135_v23 = vld [vmem:[#allocation7 + $0x38] sm:$0xff]   ;;  %v193_v36 = vunpack.c.l.bf16 %v129_v33  ;;  %v123_v46 = vld [vmem:[#allocation7 + $0x8] sm:$0xff]   ;;  %v194_v48 = vunpack.c.h.bf16 %v129_v33  ;;  %v190_v49 = vunpack.c.h.bf16 %v126_v45  ;;  %v122_v53 = vld [vmem:[#allocation7] sm:$0xff]   ;;  %v189_v59 = vunpack.c.l.bf16 %v126_v45 }
  0x1e   :  { %v199_v25 = vunpack.c.l.bf16 %v135_v23  ;;  %v200_v28 = vunpack.c.h.bf16 %v135_v23  ;;  %221 = vadd.xlane.f32.xlu2 %v195_v29  ;;  %225 = vadd.xlane.f32.xlu1 %v197_v34  ;;  %v128_v39 = vld [vmem:[#allocation7 + $0x18] sm:$0xff]   ;;  %v187_v51 = vunpack.c.l.bf16 %v123_v46  ;;  %v185_v54 = vunpack.c.l.bf16 %v122_v53  ;;  %v1728_v0 = vld [vmem:[#allocation7 + $0x20] sm:$0xff] }
  0x1f   :  { %1758 = vmatpush.bf16.msra.mxu2 %v1745_v2  ;;  %908 = vmatpush.bf16.msra.mxu0 %v1745_v2  ;;  %v192_v41 = vunpack.c.h.bf16 %v128_v39  ;;  %v191_v42 = vunpack.c.l.bf16 %v128_v39  ;;  %v186_v56 = vunpack.c.h.bf16 %v122_v53  ;;  %v188_v61 = vunpack.c.h.bf16 %v123_v46  ;;  %v1724_v1 = vld [vmem:[#allocation7] sm:$0xff]  ;;  %v1729_v2 = vld [vmem:[#allocation7 + $0x28] sm:$0xff] }
  0x20   :  { %229 = vadd.xlane.f32.xlu0 %v199_v25 }
  0x23   :  { %1759 = vmatpush.bf16.msra.mxu2 %v1744_v3  ;;  %909 = vmatpush.bf16.msra.mxu0 %v1744_v3  ;;  %v1725_v3 = vld [vmem:[#allocation7 + $0x8] sm:$0xff] }
  0x26   :  { %223 = vadd.xlane.f32.xlu2 %v196_v35  ;;  %227 = vadd.xlane.f32.xlu1 %v198_v40 }
  0x27   :  { %1760 = vmatpush.bf16.msra.mxu2 %v1743_v4  ;;  %910 = vmatpush.bf16.msra.mxu0 %v1743_v4  ;;  %v1730_v4 = vld [vmem:[#allocation7 + $0x30] sm:$0xff] }
  0x28   :  { %231 = vadd.xlane.f32.xlu0 %v200_v28 }
  0x2b   :  { %1761 = vmatpush.bf16.msra.mxu2 %v1742_v5  ;;  %911 = vmatpush.bf16.msra.mxu0 %v1742_v5  ;;  %v1726_v5 = vld [vmem:[#allocation7 + $0x10] sm:$0xff] }
  0x2e   :  { %213 = vadd.xlane.f32.xlu2 %v191_v42  ;;  %219 = vadd.xlane.f32.xlu1 %v194_v48 }
  0x2f   :  { %1762 = vmatpush.bf16.msra.mxu2 %v1741_v6  ;;  %912 = vmatpush.bf16.msra.mxu0 %v1741_v6  ;;  %v1731_v6 = vld [vmem:[#allocation7 + $0x38] sm:$0xff] }
  0x30   :  { %217 = vadd.xlane.f32.xlu0 %v193_v36 }
  0x33   :  { %1763 = vmatpush.bf16.msra.mxu2 %v1740_v7  ;;  %913 = vmatpush.bf16.msra.mxu0 %v1740_v7  ;;  %v1727_v7 = vld [vmem:[#allocation7 + $0x18] sm:$0xff] }
  0x36   :  { %934 = vmatmul.bf16.vlgmr.msra.gmra.mxu2 %v1736_v8  ;;  %914 = vmatmul.bf16.vlgmr.msra.gmra.mxu0 %v1732_v9 }
  0x37   :  { %211 = vadd.xlane.f32.xlu2 %v190_v49  ;;  %209 = vadd.xlane.f32.xlu1 %v189_v59 }
  0x38   :  { %215 = vadd.xlane.f32.xlu0 %v192_v41 }
  0x3f   :  { %201 = vadd.xlane.f32.xlu2 %v185_v54  ;;  %207 = vadd.xlane.f32.xlu1 %v188_v61 }
  0x40   :  { %205 = vadd.xlane.f32.xlu0 %v187_v51 }
  0x46   :  { %939 = vmatmul.bf16.gmra.mxu2 %v1737_v10  ;;  %919 = vmatmul.bf16.gmra.mxu0 %v1733_v11 }
  0x48   :  { %203 = vadd.xlane.f32.xlu0 %v186_v56 }
  0x56   :  { %944 = vmatmul.bf16.gmra.mxu2 %v1738_v12  ;;  %924 = vmatmul.bf16.gmra.mxu0 %v1734_v13 }
  0x66   :  { %949 = vmatmul.bf16.gmra.mxu2 %v1739_v14  ;;  %929 = vmatmul.bf16.gmra.mxu0 %v1735_v15 }
  0x91   :  { %v2090_v10 = vpop.xlane.xlu2 %221  ;;  %v2092_v11 = vpop.xlane.xlu1 %225 }
  0x92   :  { %vm676_vm9 = vweird.f32 %v2090_v10 }
  0x93   :  { %v2086_v8 = vpop.xlane.xlu0 %229 }
  0x99   :  { %v2096_v13 = vpop.xlane.xlu2 %223  ;;  %v2098_v14 = vpop.xlane.xlu1 %227 }
  0x9b   :  { %v2088_v9 = vpop.xlane.xlu0 %231 }
  0xa3   :  { %v2094_v12 = vpop.xlane.xlu0 %217 }
  0xa4   :  { %1784 = vrcp.f32 %v2094_v12  ;;  %vm646_vm0 = vweird.f32 %v2094_v12  ;;  %v652_v39 = vand.u32 2147483648, %v2094_v12  ;;  %vm513_vm4 = vcmp.gt.f32.partialorder %v2094_v12, 0.0 }
  0xa6   :  { %v653_v54 = vor.u32 1.1754944e-38, %v652_v39 }
  0xab   :  { %v2100_v15 = vpop.xlane.xlu0 %215 }
  0xb3   :  { %v2074_v17 = vpop.f32.mrf.mxu0 }
  0xb9   :  { %v935_v16 = vpop.f32.mrf.mxu2 }
  0xbb   :  { %v2076_v19 = vpop.f32.mrf.mxu0 }
  0xbc   :  { %v955_v63 = vpack.c.bf16 %v2076_v19, %v2074_v17  ;;  %v2109_v19 = vpop.xlane.xlu1 %219 }
  0xbd   :  { %1786 = vrcp.f32 %v2109_v19  ;;  %vm661_vm5 = vweird.f32 %v2109_v19  ;;  %vm514_vm11 = vcmp.gt.f32.partialorder %v2109_v19, 0.0 }
  0xbe   :  { %1788 = vrcp.f32 %v2086_v8 }
  0xbf   :  { %1790 = vrcp.f32 %v2090_v10 }
  0xc0   :  { %1792 = vrcp.f32 %v2088_v9 }
  0xc1   :  { %v937_v18 = vpop.f32.mrf.mxu2  ;;  %1794 = vrcp.f32 %v2092_v11 }
  0xc2   :  { %v959_v55 = vpack.c.bf16 %v937_v18, %v935_v16  ;;  %v2103_v16 = vpop.xlane.xlu2 %213  ;;  %1796 = vrcp.f32 %v2096_v13 }
  0xc3   :  { %v2078_v21 = vpop.f32.mrf.mxu0  ;;  %1798 = vrcp.f32 %v2098_v14 }
  0xc4   :  { %v2146_v34 = vpop.xlane.xlu1 %209 }
  0xc9   :  { %v940_v20 = vpop.f32.mrf.mxu2 }
  0xca   :  { %v2120_v23 = vpop.xlane.xlu2 %211 }
  0xcb   :  { %v2080_v24 = vpop.f32.mrf.mxu0 }
  0xcc   :  { %v956_v62 = vpack.c.bf16 %v2080_v24, %v2078_v21  ;;  %v2113_v21 = vpop.xlane.xlu0 %205 }
  0xcd   :  { %1800 = vrcp.f32 %v2113_v21  ;;  %vm556_vm12 = vweird.f32 %v2113_v21 }
  0xce   :  { %1802 = vrcp.f32 %v2100_v15 }
  0xcf   :  { %1804 = vrcp.f32 %v2103_v16 }
  0xd0   :  { %1806 = vrcp.f32 %v2120_v23 }
  0xd1   :  { %v942_v22 = vpop.f32.mrf.mxu2 }
  0xd2   :  { %v960_v52 = vpack.c.bf16 %v942_v22, %v940_v20  ;;  %v2111_v20 = vpop.eup %1784  ;;  %v2167_v45 = vpop.xlane.xlu2 %201 }
  0xd3   :  { %v925_v30 = vpop.f32.mrf.mxu0  ;;  %v642_v22 = vmul.f32 %v2111_v20, %v2094_v12  ;;  %v2128_v27 = vpop.eup %1786  ;;  %vm647_vm1 = vweird.f32 %v2111_v20 }
  0xd4   :  { %v2132_v28 = vpop.eup %1788  ;;  %vm2169_vm2 = vmor %vm646_vm0, %vm647_vm1  ;;  %vm662_vm6 = vweird.f32 %v2128_v27  ;;  %vm691_vm0 = vweird.f32 %v2096_v13 }
  0xd5   :  { %v2135_v29 = vpop.eup %1790  ;;  %v2179_v49 = vmul.f32 %v2132_v28, %v2086_v8  ;;  %vm2246_vm7 = vmor %vm661_vm5, %vm662_vm6  ;;  %vm516_vm5 = vcmp.gt.f32.partialorder %v2096_v13, 0.0  ;;  %vm736_vm6 = vweird.f32 %v2086_v8 }
  0xd6   :  { %v2143_v33 = vpop.eup %1792  ;;  %vm677_vm10 = vweird.f32 %v2135_v29 }
  0xd7   :  { %v2148_v35 = vpop.eup %1794  ;;  %v2185_v51 = vmul.f32 %v2143_v33, %v2088_v9  ;;  %vm2299_vm14 = vmor %vm676_vm9, %vm677_vm10  ;;  %vm706_vm9 = vweird.f32 %v2092_v11 }
  0xd8   :  { %v2153_v36 = vpop.eup %1796  ;;  %vm707_vm10 = vweird.f32 %v2148_v35 }
  0xd9   :  { %v945_v26 = vpop.f32.mrf.mxu2  ;;  %v2162_v41 = vpop.eup %1798  ;;  %v687_v61 = vmul.f32 %v2153_v36, %v2096_v13  ;;  %vm692_vm1 = vweird.f32 %v2153_v36 }
  0xdb   :  { %v927_v38 = vpop.f32.mrf.mxu0 }
  0xdc   :  { %v957_v60 = vpack.c.bf16 %v927_v38, %v925_v30  ;;  %v657_v30 = vmul.f32 %v2128_v27, %v2109_v19  ;;  %v650_v38 = vand.u32 2147483647, %v2094_v12 }
  0xde   :  { %v658_v42 = vsub.f32 1.0, %v657_v30  ;;  %vm2187_vm3 = vcmp.eq.f32.partialorder %v650_v38, 8.507059e+37 }
  0xe1   :  { %v947_v31 = vpop.f32.mrf.mxu2 }
  0xe2   :  { %v961_v50 = vpack.c.bf16 %v947_v31, %v945_v26  ;;  %v643_v26 = vsub.f32 1.0, %v642_v22  ;;  %v2140_v31 = vpop.xlane.xlu0 %203  ;;  %v665_v22 = vand.u32 2147483647, %v2109_v19 }
  0xe3   :  { %v930_v47 = vpop.f32.mrf.mxu0  ;;  %1808 = vrcp.f32 %v2140_v31 }
  0xe4   :  { %v644_v32 = vmul.f32 %v2111_v20, %v643_v26  ;;  %1810 = vrcp.f32 %v2167_v45  ;;  %v733_v26 = vsub.f32 1.0, %v2179_v49  ;;  %vm666_vm8 = vcmp.eq.f32.partialorder %v665_v22, 8.507059e+37 }
  0xe5   :  { %1812 = vrcp.f32 %v2146_v34 }
  0xe9   :  { %v950_v37 = vpop.f32.mrf.mxu2 }
  0xeb   :  { %v932_v57 = vpop.f32.mrf.mxu0 }
  0xec   :  { %v958_v58 = vpack.c.bf16 %v932_v57, %v930_v47 }
  0xf1   :  { %v952_v43 = vpop.f32.mrf.mxu2 }
  0xf2   :  { %v962_v44 = vpack.c.bf16 %v952_v43, %v950_v37  ;;  %v672_v37 = vmul.f32 %v2135_v29, %v2090_v10  ;;  %v645_v43 = vadd.f32 %v2111_v20, %v644_v32 }
  0xf4   :  { %1011 = vmatpush.bf16.msra.mxu1 %v962_v44  ;;  %1764 = vmatpush.bf16.msra.mxu3 %v962_v44  ;;  %v2165_v44 = vpop.eup %1800  ;;  %v649_v57 = vsel %vm2169_vm2, %v2111_v20, %v645_v43  ;;  %vm515_vm2 = vcmp.gt.f32.partialorder %v2090_v10, 0.0 }
  0xf5   :  { %3131 = vst [vmem:[#allocation18_spill] sm:$0xff] %v2165_v44  ;;  %v2175_v48 = vpop.eup %1802  ;;  %v552_v56 = vmul.f32 %v2165_v44, %v2113_v21  ;;  %vm557_vm13 = vweird.f32 %v2165_v44 }
  0xf6   :  { %vm2305_vm15 = vmor %vm556_vm12, %vm557_vm13  ;;  %vm722_vm12 = vweird.f32 %v2162_v41 }
  0xf8   :  { %1012 = vmatpush.bf16.msra.mxu1 %v961_v50  ;;  %1765 = vmatpush.bf16.msra.mxu3 %v961_v50  ;;  %v2181_v50 = vpop.eup %1804 }
  0xfc   :  { %1013 = vmatpush.bf16.msra.mxu1 %v960_v52  ;;  %1766 = vmatpush.bf16.msra.mxu3 %v960_v52  ;;  %v673_v52 = vsub.f32 1.0, %v672_v37  ;;  %v688_v37 = vsub.f32 1.0, %v687_v61 }
 0x100   :  { %1014 = vmatpush.bf16.msra.mxu1 %v959_v55  ;;  %1767 = vmatpush.bf16.msra.mxu3 %v959_v55  ;;  %v2191_v55 = vpop.eup %1806 }
 0x101   :  { %v2200_v59 = vpop.eup %1808 }
 0x102   :  { %v2250_v39 = vpop.eup %1810 }
 0x103   :  { %v2268_v46 = vpop.eup %1812  ;;  %v522_v12 = vmul.f32 %v2250_v39, %v2167_v45 }
 0x104   :  { %1015 = vmatpush.bf16.msra.mxu1 %v958_v58  ;;  %1768 = vmatpush.bf16.msra.mxu3 %v958_v58  ;;  %v659_v58 = vmul.f32 %v2128_v27, %v658_v42  ;;  %v2290_v49 = vmul.f32 %v2268_v46, %v2146_v34 }
 0x106   :  { %v660_v20 = vadd.f32 %v2128_v27, %v659_v58 }
 0x108   :  { %1016 = vmatpush.bf16.msra.mxu1 %v957_v60  ;;  %1769 = vmatpush.bf16.msra.mxu3 %v957_v60  ;;  %v2204_v60 = vmul.f32 %v2148_v35, %v2092_v11  ;;  %v664_v61 = vsel %vm2246_vm7, %v2128_v27, %v660_v20  ;;  %v682_v27 = vand.u32 2147483648, %v2090_v10  ;;  %vm737_vm7 = vweird.f32 %v2132_v28 }
 0x109   :  { %vm2377_vm13 = vmor %vm736_vm6, %vm737_vm7 }
 0x10c   :  { %1017 = vmatpush.bf16.msra.mxu1 %v956_v62  ;;  %1770 = vmatpush.bf16.msra.mxu3 %v956_v62  ;;  %v2210_v62 = vmul.f32 %v2162_v41, %v2098_v14 }
 0x110   :  { %1018 = vmatpush.bf16.msra.mxu1 %v955_v63  ;;  %1771 = vmatpush.bf16.msra.mxu3 %v955_v63  ;;  %v2214_v63 = vmul.f32 %v2175_v48, %v2100_v15 }
 0x113   :  { %1039 = vmatmul.bf16.vlgmr.msra.gmra.mxu3 %v1728_v0  ;;  %1019 = vmatmul.bf16.vlgmr.msra.gmra.mxu1 %v1724_v1  ;;  %v2218_v0 = vmul.f32 %v2181_v50, %v2103_v16  ;;  %v2225_v1 = vmul.f32 %v2191_v55, %v2120_v23 }
 0x123   :  { %1044 = vmatmul.bf16.gmra.mxu3 %v1729_v2  ;;  %1024 = vmatmul.bf16.gmra.mxu1 %v1725_v3  ;;  %v654_v2 = vsel %vm2187_vm3, %v653_v54, %v649_v57  ;;  %v667_v3 = vand.u32 2147483648, %v2109_v19  ;;  %v583_v19 = vsub.f32 1.0, %v2290_v49 }
 0x124   :  { %v2259_v53 = vsel %vm513_vm4, %v654_v2, 0.0  ;;  %vm2332_vm4 = vmor %vm691_vm0, %vm692_vm1  ;;  %vm751_vm0 = vweird.f32 %v2088_v9  ;;  %vm752_vm1 = vweird.f32 %v2143_v33 }
 0x125   :  { %v668_v54 = vor.u32 1.1754944e-38, %v667_v3 }
 0x133   :  { %1049 = vmatmul.bf16.gmra.mxu3 %v1730_v4  ;;  %1029 = vmatmul.bf16.gmra.mxu1 %v1726_v5  ;;  %v2231_v4 = vpop.xlane.xlu1 %207 }
 0x134   :  { %1814 = vrcp.f32 %v2231_v4 }
 0x13a   :  { %v2284_v22 = vpop.eup %1814 }
 0x13b   :  { %v567_v30 = vmul.f32 %v2284_v22, %v2231_v4 }
 0x143   :  { %1054 = vmatmul.bf16.gmra.mxu3 %v1731_v6  ;;  %1034 = vmatmul.bf16.gmra.mxu1 %v1727_v7  ;;  %v553_v6 = vsub.f32 1.0, %v552_v56  ;;  %v537_v7 = vmul.f32 %v2200_v59, %v2140_v31  ;;  %v674_v56 = vmul.f32 %v2135_v29, %v673_v52  ;;  %v669_v52 = vsel %vm666_vm8, %v668_v54, %v664_v61 }
 0x144   :  { %v562_v61 = vand.u32 2147483648, %v2113_v21 }
 0x145   :  { %v538_v58 = vsub.f32 1.0, %v537_v7  ;;  %v554_v43 = vmul.f32 %v2165_v44, %v553_v6  ;;  %v675_v3 = vadd.f32 %v2135_v29, %v674_v56  ;;  %v680_v6 = vand.u32 2147483647, %v2090_v10 }
 0x146   :  { %v689_v7 = vmul.f32 %v2153_v36, %v688_v37  ;;  %v523_v56 = vsub.f32 1.0, %v522_v12  ;;  %v683_v12 = vor.u32 1.1754944e-38, %v682_v27  ;;  %v695_v37 = vand.u32 2147483647, %v2096_v13 }
 0x147   :  { %v539_v38 = vmul.f32 %v2200_v59, %v538_v58  ;;  %v2293_v54 = vadd.f32 %v2165_v44, %v554_v43  ;;  %v2314_v43 = vsel %vm514_vm11, %v669_v52, 0.0  ;;  %v679_v42 = vsel %vm2299_vm14, %v2135_v29, %v675_v3  ;;  %vm2381_vm14 = vmor %vm706_vm9, %vm707_vm10 }
 0x148   :  { %vm681_vm3 = vcmp.eq.f32.partialorder %v680_v6, 8.507059e+37  ;;  %v690_v32 = vadd.f32 %v2153_v36, %v689_v7  ;;  %v2337_v29 = vor.u32 1.1754944e-38, %v562_v61  ;;  %v697_v3 = vand.u32 2147483648, %v2096_v13 }
 0x149   :  { %3140 = vst [vmem:[#allocation21_spill] sm:$0xff] %v2293_v54  ;;  %v734_v7 = vmul.f32 %v2132_v28, %v733_v26  ;;  %v2344_v49 = vmul.f32 %v2250_v39, %v523_v56  ;;  %v568_v61 = vsub.f32 1.0, %v567_v30  ;;  %vm2359_vm8 = vcmp.eq.f32.partialorder %v695_v37, 8.507059e+37 }
 0x14a   :  { %3148 = vst [vmem:[#allocation23_spill] sm:$0xff] %v2337_v29  ;;  %v698_v30 = vor.u32 1.1754944e-38, %v697_v3  ;;  %v3154_v56 = vsub.f32 1.0, %v2185_v51  ;;  %v710_v37 = vand.u32 2147483647, %v2092_v11  ;;  %vm721_vm11 = vweird.f32 %v2098_v14 }
 0x14b   :  { %v712_v51 = vand.u32 2147483648, %v2092_v11  ;;  %v757_v27 = vand.u32 2147483648, %v2088_v9  ;;  %v584_v44 = vmul.f32 %v2268_v46, %v583_v19  ;;  %v105_v3 = vld [vmem:[#allocation5] sm:$0xf]  ;;  %vm587_vm10 = vweird.f32 %v2268_v46 }
 0x190   :  { %v2105_v17 = vpop.f32.mrf.mxu1 }
 0x191   :  { %3129 = vst [vmem:[#allocation16_spill] sm:$0xff] %v2105_v17  ;;  %v2325_v17 = vadd.f32 %v2200_v59, %v539_v38  ;;  %v684_v38 = vsel %vm681_vm3, %v683_v12, %v679_v42  ;;  %v749_v12 = vmul.f32 %v2143_v33, %v3154_v56  ;;  %v727_v56 = vand.u32 2147483648, %v2098_v14  ;;  %vm2400_vm3 = vmor %vm721_vm11, %vm722_vm12 }
 0x192   :  { %v2395_v2 = vsel %vm515_vm2, %v684_v38, 0.0  ;;  %vm2417_vm2 = vmor %vm751_vm0, %vm752_vm1  ;;  %vm517_vm11 = vcmp.gt.f32.partialorder %v2092_v11, 0.0  ;;  %vm519_vm12 = vcmp.gt.f32.partialorder %v2086_v8, 0.0  ;;  %vm617_vm0 = vweird.f32 %v2181_v50 }
 0x193   :  { %3145 = vst [vmem:[#allocation22_spill] sm:$0xff] %v2325_v17  ;;  %v750_v29 = vadd.f32 %v2143_v33, %v749_v12  ;;  %vm571_vm1 = vweird.f32 %v2231_v4  ;;  %v637_v12 = vand.u32 2147483648, %v2100_v15 }
 0x196   :  { %v2107_v18 = vpop.f32.mrf.mxu3 }
 0x198   :  { %v2123_v24 = vpop.f32.mrf.mxu1 }
 0x199   :  { %3130 = vst [vmem:[#allocation17_spill] sm:$0xff] %v2123_v24  ;;  %v3150_v24 = vsub.f32 1.0, %v2204_v60 }
 0x19e   :  { %v2125_v25 = vpop.f32.mrf.mxu3 }
 0x1a0   :  { %v2173_v47 = vpop.f32.mrf.mxu1 }
 0x1a1   :  { %3134 = vst [vmem:[#allocation19_spill] sm:$0xff] %v2173_v47  ;;  %v694_v47 = vsel %vm2332_vm4, %v2153_v36, %v690_v32  ;;  %v735_v36 = vadd.f32 %v2132_v28, %v734_v7  ;;  %v742_v32 = vand.u32 2147483648, %v2086_v8  ;;  %v740_v7 = vand.u32 2147483647, %v2086_v8 }
 0x1a2   :  { %v699_v54 = vsel %vm2359_vm8, %v698_v30, %v694_v47  ;;  %vm2421_vm4 = vcmp.eq.f32.partialorder %v710_v37, 8.507059e+37  ;;  %v713_v47 = vor.u32 1.1754944e-38, %v712_v51  ;;  %v758_v37 = vor.u32 1.1754944e-38, %v757_v27 }
 0x1a3   :  { %v739_v38 = vsel %vm2377_vm13, %v2132_v28, %v735_v36  ;;  %vm2427_vm6 = vcmp.eq.f32.partialorder %v740_v7, 8.507059e+37  ;;  %vm586_vm8 = vweird.f32 %v2146_v34  ;;  %v2451_v7 = vsel %vm516_vm5, %v699_v54, 0.0 }
 0x1a4   :  { %v590_v27 = vand.u32 2147483647, %v2146_v34  ;;  %vm518_vm5 = vcmp.gt.f32.partialorder %v2098_v14, 0.0  ;;  %vm520_vm13 = vcmp.gt.f32.partialorder %v2088_v9, 0.0  ;;  %v2469_v54 = vadd.f32 %v2268_v46, %v584_v44 }
 0x1a5   :  { %v3171_v8 = vsub.f32 1.0, %v2225_v1  ;;  %v622_v1 = vand.u32 2147483648, %v2103_v16 }
 0x1a6   :  { %v2160_v40 = vpop.f32.mrf.mxu3 }
 0x1a8   :  { %v2262_v57 = vpop.f32.mrf.mxu1 }
 0x1a9   :  { %3139 = vst [vmem:[#allocation20_spill] sm:$0xff] %v2262_v57  ;;  %v704_v57 = vmul.f32 %v2148_v35, %v3150_v24  ;;  %v3153_v24 = vsub.f32 1.0, %v2210_v62  ;;  %v2438_v62 = vld [vmem:[#allocation5 + $0x4] sm:$0xff]  }
 0x1aa   :  { %v138_v17 = vunpack.c.l.bf16 %v2438_v62 }
 0x1ab   :  { %v719_v60 = vmul.f32 %v2162_v41, %v3153_v24  ;;  %v705_v52 = vadd.f32 %v2148_v35, %v704_v57  ;;  %v725_v24 = vand.u32 2147483647, %v2098_v14  ;;  %v3173_v14 = vsub.f32 1.0, %v2214_v63 }
 0x1ac   :  { %155 = vadd.xlane.f32.xlu2 %v138_v17  ;;  %v605_v17 = vand.u32 2147483647, %v2120_v23 }
 0x1ad   :  { %v720_v57 = vadd.f32 %v2162_v41, %v719_v60  ;;  %v755_v60 = vand.u32 2147483647, %v2088_v9  ;;  %v709_v10 = vsel %vm2381_vm14, %v2148_v35, %v705_v52  ;;  %v743_v35 = vor.u32 1.1754944e-38, %v742_v32 }
 0x1ae   :  { %v2233_v5 = vpop.f32.mrf.mxu3  ;;  %vm2434_vm7 = vcmp.eq.f32.partialorder %v725_v24, 8.507059e+37  ;;  %v728_v52 = vor.u32 1.1754944e-38, %v727_v56  ;;  %v754_v32 = vsel %vm2417_vm2, %v2143_v33, %v750_v29  ;;  %v714_v33 = vsel %vm2421_vm4, %v713_v47, %v709_v10 }
 0x1af   :  { %v724_v28 = vsel %vm2400_vm3, %v2162_v41, %v720_v57  ;;  %vm2444_vm9 = vcmp.eq.f32.partialorder %v755_v60, 8.507059e+37  ;;  %v137_v41 = vunpack.c.l.bf16 %v105_v3  ;;  %v592_v57 = vand.u32 2147483648, %v2146_v34 }
 0x1b0   :  { %v2340_v6 = vpop.f32.mrf.mxu1  ;;  %v744_v29 = vsel %vm2427_vm6, %v743_v35, %v739_v38  ;;  %v729_v13 = vsel %vm2434_vm7, %v728_v52, %v724_v28  ;;  %v759_v11 = vsel %vm2444_vm9, %v758_v37, %v754_v32  ;;  %v599_v24 = vmul.f32 %v2191_v55, %v3171_v8 }
 0x1b1   :  { %3149 = vst [vmem:[#allocation24_spill] sm:$0xff] %v2340_v6  ;;  %v2398_v6 = vmul.f32 %v2284_v22, %v568_v61  ;;  %153 = vadd.xlane.f32.xlu1 %v137_v41  ;;  %v3172_v56 = vsub.f32 1.0, %v2218_v0  ;;  %v629_v10 = vmul.f32 %v2175_v48, %v3173_v14  ;;  %v2480_v38 = vsel %vm517_vm11, %v714_v33, 0.0 }
 0x1b2   :  { %vm616_vm14 = vweird.f32 %v2103_v16  ;;  %v2484_v9 = vsel %vm519_vm12, %v744_v29, 0.0  ;;  %v2487_v44 = vsel %vm518_vm5, %v729_v13, 0.0  ;;  %vm631_vm3 = vweird.f32 %v2100_v15  ;;  %v2525_v29 = vld [vmem:[#allocation5 + $0xc] sm:$0xff]   ;;  %vm2531_vm5 = vmor %vm586_vm8, %vm587_vm10 }
 0x1b3   :  { %v614_v60 = vmul.f32 %v2181_v50, %v3172_v56  ;;  %vm632_vm2 = vweird.f32 %v2175_v48  ;;  %v2491_v0 = vsel %vm520_vm13, %v759_v11, 0.0  ;;  %vm2498_vm4 = vmor %vm616_vm14, %vm617_vm0  ;;  %v620_v28 = vand.u32 2147483647, %v2103_v16 }
 0x1b4   :  { %v630_v52 = vadd.f32 %v2175_v48, %v629_v10  ;;  %v635_v37 = vand.u32 2147483647, %v2100_v15  ;;  %vm541_vm6 = vweird.f32 %v2140_v31  ;;  %vm542_vm7 = vweird.f32 %v2200_v59  ;;  %vm2517_vm12 = vmor %vm631_vm3, %vm632_vm2 }
 0x1b5   :  { %v615_v42 = vadd.f32 %v2181_v50, %v614_v60  ;;  %vm601_vm9 = vweird.f32 %v2120_v23  ;;  %vm602_vm11 = vweird.f32 %v2191_v55  ;;  %v600_v51 = vadd.f32 %v2191_v55, %v599_v24 }
 0x1b6   :  { %v2282_v20 = vpop.f32.mrf.mxu3  ;;  %v607_v41 = vand.u32 2147483648, %v2120_v23  ;;  %v139_v33 = vunpack.c.h.bf16 %v2438_v62  ;;  %v623_v11 = vor.u32 1.1754944e-38, %v622_v1  ;;  %v638_v8 = vor.u32 1.1754944e-38, %v637_v12  ;;  %vm2561_vm3 = vmor %vm601_vm9, %vm602_vm11 }
 0x1b7   :  { %v1072_v13 = vmul.f32 %v2282_v20, %v2480_v38  ;;  %v140_v24 = vunpack.c.l.bf16 %v2525_v29  ;;  %v3180_v62 = vand.u32 2147483647, %v2113_v21  ;;  %v619_v60 = vsel %vm2498_vm4, %v2181_v50, %v615_v42 }
 0x1b8   :  { %v2425_v19 = vpop.f32.mrf.mxu1  ;;  %vm621_vm8 = vcmp.eq.f32.partialorder %v620_v28, 8.507059e+37  ;;  %v634_v20 = vsel %vm2517_vm12, %v2175_v48, %v630_v52  ;;  %vm636_vm10 = vcmp.eq.f32.partialorder %v635_v37, 8.507059e+37  ;;  %157 = vadd.xlane.f32.xlu0 %v139_v33  ;;  %vm572_vm14 = vweird.f32 %v2284_v22  ;;  %v3202_v56 = vld [vmem:[#allocation24_spill] sm:$0xff] }
 0x1b9   :  { %vm2540_vm13 = vcmp.eq.f32.partialorder %v3180_v62, 8.507059e+37  ;;  %v1071_v14 = vmul.f32 %v2233_v5, %v2451_v7  ;;  %vm2553_vm0 = vcmp.eq.f32.partialorder %v590_v27, 8.507059e+37  ;;  %159 = vadd.xlane.f32.xlu1 %v140_v24  ;;  %v593_v5 = vor.u32 1.1754944e-38, %v592_v57  ;;  %vm2588_vm11 = vmor %vm571_vm1, %vm572_vm14  ;;  %v3199_v24 = vld [vmem:[#allocation23_spill] sm:$0xff] }
 0x1ba   :  { %v608_v27 = vor.u32 1.1754944e-38, %v607_v41  ;;  %vm511_vm2 = vcmp.gt.f32.partialorder %v2103_v16, 0.0  ;;  %v1070_v1 = vmul.f32 %v2160_v40, %v2395_v2  ;;  %vm512_vm4 = vcmp.gt.f32.partialorder %v2100_v15, 0.0  ;;  %v114_v16 = vld [vmem:[#allocation5 + $0x24] sm:$0xff]  }
 0x1bb   :  { %v639_v12 = vsel %vm636_vm10, %v638_v8, %v634_v20  ;;  %v3187_v42 = vand.u32 2147483648, %v2231_v4  ;;  %v604_v57 = vsel %vm2561_vm3, %v2191_v55, %v600_v51  ;;  %vm606_vm9 = vcmp.eq.f32.partialorder %v605_v17, 8.507059e+37  ;;  %vm2611_vm10 = vmor %vm541_vm6, %vm542_vm7  ;;  %v3200_v20 = vld [vmem:[#allocation22_spill] sm:$0xff] }
 0x1bc   :  { %vm509_vm12 = vcmp.gt.f32.partialorder %v2146_v34, 0.0  ;;  %v1081_v40 = vpack.c.bf16 %v1071_v14, %v1070_v1  ;;  %vm527_vm1 = vweird.f32 %v2250_v39  ;;  %v1068_v28 = vmul.f32 %v2107_v18, %v2259_v53 }
 0x1bd   :  { %v609_v52 = vsel %vm606_vm9, %v608_v27, %v604_v57  ;;  %v532_v37 = vand.u32 2147483648, %v2167_v45  ;;  %v3192_v18 = vand.u32 2147483647, %v2231_v4  ;;  %v525_v3 = vadd.f32 %v2250_v39, %v2344_v49  ;;  %v3206_v57 = vld [vmem:[#allocation16_spill] sm:$0xff] }
 0x1be   :  { %v2355_v26 = vpop.f32.mrf.mxu3  ;;  %vm507_vm7 = vcmp.gt.f32.partialorder %v2113_v21, 0.0  ;;  %v3201_v14 = vand.u32 2147483647, %v2140_v31 }
 0x1bf   :  { %vm576_vm14 = vcmp.eq.f32.partialorder %v3192_v18, 8.507059e+37  ;;  %v533_v34 = vor.u32 1.1754944e-38, %v532_v37  ;;  %v2689_v18 = vld [vmem:[#allocation5 + $0x10] sm:$0xff] }
 0x1c0   :  { %v2503_v36 = vpop.f32.mrf.mxu1  ;;  %vm546_vm3 = vcmp.eq.f32.partialorder %v3201_v14, 8.507059e+37 }
 0x1c6   :  { %v1055_v30 = vpop.f32.mrf.mxu3 }
 0x1c7   :  { %v1074_v61 = vmul.f32 %v1055_v30, %v2484_v9  ;;  %v1073_v30 = vmul.f32 %v2355_v26, %v2487_v44 }
 0x1c8   :  { %v1037_v35 = vpop.f32.mrf.mxu1 }
 0x1c9   :  { %v1082_v48 = vpack.c.bf16 %v1073_v30, %v1072_v13  ;;  %v3196_v13 = vld [vmem:[#allocation18_spill] sm:$0xff] }
 0x1ce   :  { %v1057_v63 = vpop.f32.mrf.mxu3 }
 0x1cf   :  { %v1075_v47 = vmul.f32 %v1057_v63, %v2491_v0  ;;  %v589_v63 = vsel %vm2531_vm5, %v2268_v46, %v2469_v54  ;;  %v578_v46 = vor.u32 1.1754944e-38, %v3187_v42  ;;  %v1069_v54 = vmul.f32 %v2125_v25, %v2314_v43 }
 0x1d0   :  { %vm526_vm5 = vweird.f32 %v2167_v45  ;;  %v594_v55 = vsel %vm2553_vm0, %v593_v5, %v589_v63  ;;  %v2600_v25 = vsel %vm512_vm4, %v639_v12, 0.0  ;;  %vm508_vm0 = vcmp.gt.f32.partialorder %v2231_v4, 0.0  ;;  %v110_v63 = vld [vmem:[#allocation5 + $0x14] sm:$0xff]  }
 0x1d1   :  { %v1083_v32 = vpack.c.bf16 %v1075_v47, %v1074_v61  ;;  %v624_v61 = vsel %vm621_vm8, %v623_v11, %v619_v60  ;;  %v570_v47 = vadd.f32 %v2284_v22, %v2398_v6  ;;  %vm510_vm8 = vcmp.gt.f32.partialorder %v2120_v23, 0.0  ;;  %vm2628_vm6 = vmor %vm526_vm5, %vm527_vm1  ;;  %v3197_v11 = vld [vmem:[#allocation21_spill] sm:$0xff] }
 0x1d2   :  { %v2598_v6 = vsel %vm511_vm2, %v624_v61, 0.0  ;;  %v1067_v17 = vmul.f32 %v1037_v35, %v2600_v25  ;;  %v1080_v41 = vpack.c.bf16 %v1069_v54, %v1068_v28  ;;  %v2637_v49 = vsel %vm509_vm12, %v594_v55, 0.0  ;;  %v112_v55 = vld [vmem:[#allocation5 + $0x1c] sm:$0xff]  }
 0x1d3   :  { %1132 = vmatpush.bf16.msrb.mxu2 %v1083_v32  ;;  %v574_v30 = vsel %vm2588_vm11, %v2284_v22, %v570_v47  ;;  %v530_v32 = vand.u32 2147483647, %v2167_v45  ;;  %v1066_v51 = vmul.f32 %v2503_v36, %v2598_v6  ;;  %v3195_v22 = vand.u32 2147483648, %v2140_v31 }
 0x1d4   :  { %v2641_v36 = vsel %vm510_vm8, %v609_v52, 0.0  ;;  %v3198_v8 = vsel %vm2305_vm15, %v3196_v13, %v3197_v11  ;;  %v579_v60 = vsel %vm576_vm14, %v578_v46, %v574_v30  ;;  %v544_v23 = vsel %vm2611_vm10, %v2200_v59, %v3200_v20  ;;  %v2686_v52 = vld [vmem:[#allocation5 + $0x8] sm:$0xff]  ;;  %v120_v11 = vld [vmem:[#allocation5 + $0x3c] sm:$0xf]  ;;  %v1752_v20 = vld [vmem:[#allocation10 + $0x20] sm:$0xff] }
 0x1d5   :  { %v548_v26 = vor.u32 1.1754944e-38, %v3195_v22  ;;  %v564_v62 = vsel %vm2540_vm13, %v3199_v24, %v3198_v8  ;;  %v529_v58 = vsel %vm2628_vm6, %v2250_v39, %v525_v3  ;;  %vm531_vm15 = vcmp.eq.f32.partialorder %v530_v32, 8.507059e+37  ;;  %v116_v3 = vld [vmem:[#allocation5 + $0x2c] sm:$0xff]  }
 0x1d6   :  { %v1064_v10 = vmul.f32 %v3202_v56, %v2637_v49  ;;  %v1065_v4 = vmul.f32 %v2425_v19, %v2641_v36  ;;  %v1079_v50 = vpack.c.bf16 %v1067_v17, %v1066_v51  ;;  %vm506_vm13 = vcmp.gt.f32.partialorder %v2140_v31, 0.0  ;;  %v3203_v19 = vld [vmem:[#allocation19_spill] sm:$0xff]  ;;  %v3204_v31 = vld [vmem:[#allocation20_spill] sm:$0xff]  ;;  %v2698_v24 = vld [vmem:[#allocation5 + $0x28] sm:$0xff] }
 0x1d7   :  { %1133 = vmatpush.bf16.msrb.mxu2 %v1082_v48  ;;  %v2668_v59 = vsel %vm507_vm7, %v564_v62, 0.0  ;;  %v2670_v48 = vsel %vm508_vm0, %v579_v60, 0.0  ;;  %v141_v5 = vunpack.c.h.bf16 %v2525_v29  ;;  %v549_v39 = vsel %vm546_vm3, %v548_v26, %v544_v23  ;;  %v3205_v29 = vld [vmem:[#allocation17_spill] sm:$0xff]  ;;  %v2692_v17 = vld [vmem:[#allocation5 + $0x18] sm:$0xff]  ;;  %v2695_v26 = vld [vmem:[#allocation5 + $0x20] sm:$0xff] }
 0x1d8   :  { %vm505_vm2 = vcmp.gt.f32.partialorder %v2167_v45, 0.0  ;;  %v534_v27 = vsel %vm531_vm15, %v533_v34, %v529_v58  ;;  %v142_v1 = vunpack.c.l.bf16 %v110_v63  ;;  %v1062_v61 = vmul.f32 %v3203_v19, %v2668_v59  ;;  %v1755_v62 = vld [vmem:[#allocation10 + $0x38] sm:$0xff]  ;;  %v1754_v60 = vld [vmem:[#allocation10 + $0x30] sm:$0xff]  ;;  %v1753_v34 = vld [vmem:[#allocation10 + $0x28] sm:$0xff] }
 0x1d9   :  { %161 = vadd.xlane.f32.xlu2 %v141_v5  ;;  %v1063_v21 = vmul.f32 %v3204_v31, %v2670_v48  ;;  %v1078_v12 = vpack.c.bf16 %v1065_v4, %v1064_v10  ;;  %v2678_v47 = vsel %vm506_vm13, %v549_v39, 0.0  ;;  %v2680_v42 = vsel %vm505_vm2, %v534_v27, 0.0  ;;  %1305 = vmatpush.bf16.msrb.mxu3 %v1755_v62  ;;  %v2701_v23 = vld [vmem:[#allocation5 + $0x30] sm:$0xff]  ;;  %v1751_v58 = vld [vmem:[#allocation10 + $0x18] sm:$0xff]  ;;  %v1748_v27 = vld [vmem:[#allocation10] sm:$0xff] }
 0x1da   :  { %163 = vadd.xlane.f32.xlu0 %v142_v1  ;;  %v1061_v46 = vmul.f32 %v3205_v29, %v2678_v47  ;;  %v1060_v54 = vmul.f32 %v3206_v57, %v2680_v42  ;;  %v143_v35 = vunpack.c.h.bf16 %v110_v63  ;;  %v144_v28 = vunpack.c.l.bf16 %v112_v55  ;;  %v1750_v10 = vld [vmem:[#allocation10 + $0x10] sm:$0xff]  ;;  %v2704_v4 = vld [vmem:[#allocation5 + $0x38] sm:$0xff]  ;;  %v1749_v63 = vld [vmem:[#allocation10 + $0x8] sm:$0xff] }
 0x1db   :  { %1134 = vmatpush.bf16.msrb.mxu2 %v1081_v40  ;;  %v1077_v45 = vpack.c.bf16 %v1063_v21, %v1062_v61  ;;  %v1716_v40 = vld [vmem:[#allocation5] sm:$0xff]  ;;  %v145_v37 = vunpack.c.h.bf16 %v112_v55  ;;  %v146_v30 = vunpack.c.l.bf16 %v114_v16  ;;  %v147_v32 = vunpack.c.h.bf16 %v114_v16 }
 0x1dc   :  { %v1076_v15 = vpack.c.bf16 %v1061_v46, %v1060_v54  ;;  %165 = vadd.xlane.f32.xlu1 %v143_v35  ;;  %v148_v51 = vunpack.c.l.bf16 %v116_v3  ;;  %v149_v33 = vunpack.c.h.bf16 %v116_v3  ;;  %v152_v8 = vunpack.c.l.bf16 %v120_v11 }
 0x1dd   :  { %1306 = vmatpush.bf16.msrb.mxu3 %v1754_v60 }
 0x1df   :  { %1135 = vmatpush.bf16.msrb.mxu2 %v1080_v41  ;;  %v118_v41 = vld [vmem:[#allocation5 + $0x34] sm:$0xff]  }
 0x1e0   :  { %v150_v22 = vunpack.c.l.bf16 %v118_v41  ;;  %v151_v13 = vunpack.c.h.bf16 %v118_v41 }
 0x1e1   :  { %167 = vadd.xlane.f32.xlu2 %v144_v28  ;;  %1307 = vmatpush.bf16.msrb.mxu3 %v1753_v34  ;;  %v2741_v34 = vld [vmem:[%s3123_s4] ss:$0 sm:$0xff] }
 0x1e2   :  { %169 = vadd.xlane.f32.xlu0 %v145_v37 }
 0x1e3   :  { %1136 = vmatpush.bf16.msrb.mxu2 %v1079_v50 }
 0x1e4   :  { %171 = vadd.xlane.f32.xlu1 %v146_v30 }
 0x1e5   :  { %1308 = vmatpush.bf16.msrb.mxu3 %v1752_v20 }
 0x1e7   :  { %1137 = vmatpush.bf16.msrb.mxu2 %v1078_v12 }
 0x1e9   :  { %173 = vadd.xlane.f32.xlu2 %v147_v32  ;;  %1309 = vmatpush.bf16.msrb.mxu3 %v1751_v58 }
 0x1ea   :  { %175 = vadd.xlane.f32.xlu0 %v148_v51 }
 0x1eb   :  { %1138 = vmatpush.bf16.msrb.mxu2 %v1077_v45 }
 0x1ec   :  { %177 = vadd.xlane.f32.xlu1 %v149_v33 }
 0x1ed   :  { %1310 = vmatpush.bf16.msrb.mxu3 %v1750_v10 }
 0x1ef   :  { %1139 = vmatpush.bf16.msrb.mxu2 %v1076_v15 }
 0x1f1   :  { %179 = vadd.xlane.f32.xlu2 %v150_v22  ;;  %1311 = vmatpush.bf16.msrb.mxu3 %v1749_v63 }
 0x1f2   :  { %1140 = vmatmul.bf16.vlgmr.msrb.gmra.mxu2 %v1716_v40  ;;  %181 = vadd.xlane.f32.xlu0 %v151_v13 }
 0x1f4   :  { %183 = vadd.xlane.f32.xlu1 %v152_v8 }
 0x1f5   :  { %1312 = vmatpush.bf16.msrb.mxu3 %v1748_v27 }
 0x202   :  { %1145 = vmatmul.bf16.gmra.mxu2 %v2686_v52 }
 0x212   :  { %1150 = vmatmul.bf16.gmra.mxu2 %v2689_v18 }
 0x21f   :  { %v156_v56 = vpop.xlane.xlu2 %155 }
 0x220   :  { %vm269_vm12 = vweird.f32 %v156_v56  ;;  %v275_v35 = vand.u32 2147483648, %v156_v56  ;;  %v273_v30 = vand.u32 2147483647, %v156_v56  ;;  %vm234_vm6 = vcmp.gt.f32.partialorder %v156_v56, 0.0 }
 0x222   :  { %1155 = vmatmul.bf16.gmra.mxu2 %v2692_v17  ;;  %v276_v33 = vor.u32 1.1754944e-38, %v275_v35  ;;  %vm274_vm14 = vcmp.eq.f32.partialorder %v273_v30, 8.507059e+37 }
 0x224   :  { %v154_v14 = vpop.xlane.xlu1 %153 }
 0x225   :  { %1816 = vrcp.f32 %v154_v14  ;;  %vm254_vm4 = vweird.f32 %v154_v14  ;;  %v258_v29 = vand.u32 2147483647, %v154_v14  ;;  %v260_v46 = vand.u32 2147483648, %v154_v14 }
 0x226   :  { %1818 = vrcp.f32 %v156_v56  ;;  %vm233_vm10 = vcmp.gt.f32.partialorder %v154_v14, 0.0 }
 0x227   :  { %vm259_vm1 = vcmp.eq.f32.partialorder %v258_v29, 8.507059e+37  ;;  %v261_v55 = vor.u32 1.1754944e-38, %v260_v46 }
 0x22b   :  { %v1817_v50 = vpop.eup %1816  ;;  %v2707_v61 = vpop.xlane.xlu0 %157 }
 0x22c   :  { %v250_v5 = vmul.f32 %v1817_v50, %v154_v14  ;;  %v1819_v39 = vpop.eup %1818  ;;  %v2709_v31 = vpop.xlane.xlu1 %159  ;;  %1820 = vrcp.f32 %v2707_v61  ;;  %vm255_vm9 = vweird.f32 %v1817_v50  ;;  %vm284_vm7 = vweird.f32 %v2707_v61 }
 0x22d   :  { %v265_v1 = vmul.f32 %v1819_v39, %v156_v56  ;;  %1822 = vrcp.f32 %v2709_v31  ;;  %vm2715_vm11 = vmor %vm254_vm4, %vm255_vm9  ;;  %vm270_vm5 = vweird.f32 %v1819_v39  ;;  %vm299_vm15 = vweird.f32 %v2709_v31 }
 0x22e   :  { %v251_v19 = vsub.f32 1.0, %v250_v5  ;;  %vm2725_vm8 = vmor %vm269_vm12, %vm270_vm5  ;;  %v305_v29 = vand.u32 2147483648, %v2709_v31  ;;  %vm235_vm9 = vcmp.gt.f32.partialorder %v2707_v61, 0.0  ;;  %vm236_vm12 = vcmp.gt.f32.partialorder %v2709_v31, 0.0 }
 0x22f   :  { %v266_v21 = vsub.f32 1.0, %v265_v1  ;;  %v288_v1 = vand.u32 2147483647, %v2707_v61 }
 0x230   :  { %v252_v12 = vmul.f32 %v1817_v50, %v251_v19 }
 0x231   :  { %v267_v57 = vmul.f32 %v1819_v39, %v266_v21  ;;  %vm289_vm2 = vcmp.eq.f32.partialorder %v288_v1, 8.507059e+37 }
 0x232   :  { %1160 = vmatmul.bf16.gmra.mxu2 %v2695_v26  ;;  %v253_v45 = vadd.f32 %v1817_v50, %v252_v12  ;;  %v2713_v54 = vpop.eup %1820 }
 0x233   :  { %v2719_v40 = vpop.eup %1822  ;;  %v280_v28 = vmul.f32 %v2713_v54, %v2707_v61  ;;  %v268_v16 = vadd.f32 %v1819_v39, %v267_v57  ;;  %vm285_vm0 = vweird.f32 %v2713_v54 }
 0x234   :  { %v257_v37 = vsel %vm2715_vm11, %v1817_v50, %v253_v45  ;;  %v295_v32 = vmul.f32 %v2719_v40, %v2709_v31  ;;  %vm2761_vm3 = vmor %vm284_vm7, %vm285_vm0  ;;  %vm300_vm13 = vweird.f32 %v2719_v40 }
 0x235   :  { %v262_v41 = vsel %vm259_vm1, %v261_v55, %v257_v37  ;;  %v281_v22 = vsub.f32 1.0, %v280_v28  ;;  %v272_v11 = vsel %vm2725_vm8, %v1819_v39, %v268_v16  ;;  %v290_v39 = vand.u32 2147483648, %v2707_v61  ;;  %vm2777_vm4 = vmor %vm299_vm15, %vm300_vm13 }
 0x236   :  { %v296_v8 = vsub.f32 1.0, %v295_v32  ;;  %v2735_v62 = vsel %vm233_vm10, %v262_v41, 0.0  ;;  %v277_v14 = vsel %vm274_vm14, %v276_v33, %v272_v11  ;;  %v303_v37 = vand.u32 2147483647, %v2709_v31 }
 0x237   :  { %v282_v58 = vmul.f32 %v2713_v54, %v281_v22  ;;  %v2748_v10 = vsel %vm234_vm6, %v277_v14, 0.0  ;;  %v291_v57 = vor.u32 1.1754944e-38, %v290_v39  ;;  %v306_v41 = vor.u32 1.1754944e-38, %v305_v29 }
 0x238   :  { %v297_v56 = vmul.f32 %v2719_v40, %v296_v8  ;;  %vm304_vm11 = vcmp.eq.f32.partialorder %v303_v37, 8.507059e+37 }
 0x239   :  { %v283_v27 = vadd.f32 %v2713_v54, %v282_v58 }
 0x23a   :  { %v298_v15 = vadd.f32 %v2719_v40, %v297_v56 }
 0x23b   :  { %v287_v28 = vsel %vm2761_vm3, %v2713_v54, %v283_v27 }
 0x23c   :  { %v302_v54 = vsel %vm2777_vm4, %v2719_v40, %v298_v15 }
 0x23d   :  { %v307_v61 = vsel %vm304_vm11, %v306_v41, %v302_v54 }
 0x242   :  { %1165 = vmatmul.bf16.gmra.mxu2 %v2698_v24 }
 0x24c   :  { %v2731_v13 = vpop.xlane.xlu2 %161 }
 0x24d   :  { %v2743_v20 = vpop.xlane.xlu0 %163  ;;  %1824 = vrcp.f32 %v2731_v13  ;;  %vm314_vm5 = vweird.f32 %v2731_v13  ;;  %v318_v27 = vand.u32 2147483647, %v2731_v13  ;;  %vm237_vm0 = vcmp.gt.f32.partialorder %v2731_v13, 0.0 }
 0x24e   :  { %1826 = vrcp.f32 %v2743_v20  ;;  %vm329_vm10 = vweird.f32 %v2743_v20  ;;  %v335_v29 = vand.u32 2147483648, %v2743_v20  ;;  %vm238_vm15 = vcmp.gt.f32.partialorder %v2743_v20, 0.0 }
 0x24f   :  { %v2784_v22 = vpop.xlane.xlu1 %165  ;;  %vm319_vm6 = vcmp.eq.f32.partialorder %v318_v27, 8.507059e+37 }
 0x250   :  { %1828 = vrcp.f32 %v2784_v22  ;;  %vm344_vm13 = vweird.f32 %v2784_v22 }
 0x252   :  { %1170 = vmatmul.bf16.gmra.mxu2 %v2701_v23 }
 0x253   :  { %v2758_v19 = vpop.eup %1824 }
 0x254   :  { %v2769_v55 = vpop.eup %1826  ;;  %v310_v35 = vmul.f32 %v2758_v19, %v2731_v13  ;;  %v2793_v14 = vpop.xlane.xlu2 %167  ;;  %vm315_vm1 = vweird.f32 %v2758_v19 }
 0x255   :  { %v325_v32 = vmul.f32 %v2769_v55, %v2743_v20  ;;  %1830 = vrcp.f32 %v2793_v14  ;;  %vm2811_vm8 = vmor %vm314_vm5, %vm315_vm1  ;;  %vm330_vm14 = vweird.f32 %v2769_v55  ;;  %vm239_vm1 = vcmp.gt.f32.partialorder %v2784_v22, 0.0 }
 0x256   :  { %v311_v33 = vsub.f32 1.0, %v310_v35  ;;  %v2808_v1 = vpop.eup %1828  ;;  %vm2827_vm7 = vmor %vm329_vm10, %vm330_vm14  ;;  %vm240_vm10 = vcmp.gt.f32.partialorder %v2793_v14, 0.0 }
 0x257   :  { %v326_v8 = vsub.f32 1.0, %v325_v32 }
 0x258   :  { %v312_v58 = vmul.f32 %v2758_v19, %v311_v33  ;;  %v336_v33 = vor.u32 1.1754944e-38, %v335_v29 }
 0x259   :  { %v327_v39 = vmul.f32 %v2769_v55, %v326_v8  ;;  %v2834_v8 = vpop.xlane.xlu0 %169 }
 0x25a   :  { %v313_v56 = vadd.f32 %v2758_v19, %v312_v58  ;;  %1832 = vrcp.f32 %v2834_v8  ;;  %vm374_vm14 = vweird.f32 %v2834_v8 }
 0x25b   :  { %v328_v15 = vadd.f32 %v2769_v55, %v327_v39  ;;  %v2819_v35 = vpop.eup %1830  ;;  %v350_v39 = vand.u32 2147483648, %v2784_v22 }
 0x25c   :  { %v317_v37 = vsel %vm2811_vm8, %v2758_v19, %v313_v56  ;;  %vm360_vm11 = vweird.f32 %v2819_v35 }
 0x25d   :  { %v332_v19 = vsel %vm2827_vm7, %v2769_v55, %v328_v15 }
 0x260   :  { %v2858_v12 = vpop.eup %1832 }
 0x262   :  { %1175 = vmatmul.bf16.gmra.mxu2 %v2704_v4 }
 0x275   :  { %v1141_v51 = vpop.f32.mrf.mxu2 }
 0x276   :  { %v1181_v60 = vmul.f32 %v1141_v51, %v2735_v62  ;;  %v292_v51 = vsel %vm289_vm2, %v291_v57, %v287_v28  ;;  %v340_v28 = vmul.f32 %v2808_v1, %v2784_v22  ;;  %vm345_vm2 = vweird.f32 %v2808_v1 }
 0x277   :  { %v2789_v11 = vsel %vm235_vm9, %v292_v51, 0.0  ;;  %v355_v51 = vmul.f32 %v2819_v35, %v2793_v14  ;;  %vm2861_vm4 = vmor %vm344_vm13, %vm345_vm2  ;;  %vm359_vm9 = vweird.f32 %v2793_v14  ;;  %vm241_vm2 = vcmp.gt.f32.partialorder %v2834_v8, 0.0 }
 0x278   :  { %v1200_v63 = vadd.f32 %v2741_v34, %v1181_v60  ;;  %v341_v54 = vsub.f32 1.0, %v340_v28  ;;  %v351_v28 = vor.u32 1.1754944e-38, %v350_v39  ;;  %vm2877_vm5 = vmor %vm359_vm9, %vm360_vm11 }
 0x27a   :  { %v1216_v46 = vmax.f32 %v1200_v63, 0.0 }
 0x27d   :  { %v1143_v50 = vpop.f32.mrf.mxu2 }
 0x27e   :  { %v1182_v5 = vmul.f32 %v1143_v50, %v2748_v10  ;;  %v2798_v50 = vsel %vm236_vm12, %v307_v61, 0.0  ;;  %v356_v61 = vsub.f32 1.0, %v355_v51 }
 0x280   :  { %v1201_v21 = vadd.f32 %v2741_v34, %v1182_v5  ;;  %v320_v5 = vand.u32 2147483648, %v2731_v13  ;;  %v2844_v13 = vpop.xlane.xlu1 %171  ;;  %v357_v56 = vmul.f32 %v2819_v35, %v356_v61 }
 0x281   :  { %1834 = vrcp.f32 %v2844_v13  ;;  %vm242_vm9 = vcmp.gt.f32.partialorder %v2844_v13, 0.0 }
 0x282   :  { %v1217_v45 = vmax.f32 %v1201_v21, 0.0  ;;  %v321_v57 = vor.u32 1.1754944e-38, %v320_v5 }
 0x284   :  { %v1232_v16 = vpack.c.bf16 %v1217_v45, %v1216_v46  ;;  %v322_v41 = vsel %vm319_vm6, %v321_v57, %v317_v37  ;;  %v358_v37 = vadd.f32 %v2819_v35, %v357_v56  ;;  %vm375_vm6 = vweird.f32 %v2858_v12 }
 0x285   :  { %v1146_v3 = vpop.f32.mrf.mxu2  ;;  %vm2911_vm7 = vmor %vm374_vm14, %vm375_vm6 }
 0x286   :  { %1313 = vmatmul.bf16.vlgmr.msrb.gmra.mxu3 %v1232_v16  ;;  %v1183_v60 = vmul.f32 %v1146_v3, %v2789_v11  ;;  %v333_v16 = vand.u32 2147483647, %v2743_v20 }
 0x288   :  { %v1202_v31 = vadd.f32 %v2741_v34, %v1183_v60  ;;  %vm334_vm3 = vcmp.eq.f32.partialorder %v333_v16, 8.507059e+37  ;;  %v2839_v60 = vsel %vm237_vm0, %v322_v41, 0.0  ;;  %v2869_v16 = vpop.eup %1834  ;;  %vm389_vm0 = vweird.f32 %v2844_v13 }
 0x28a   :  { %v1218_v46 = vmax.f32 %v1202_v31, 0.0  ;;  %v342_v31 = vmul.f32 %v2808_v1, %v341_v54  ;;  %v385_v54 = vmul.f32 %v2869_v16, %v2844_v13 }
 0x28c   :  { %v343_v27 = vadd.f32 %v2808_v1, %v342_v31 }
 0x28d   :  { %v1148_v40 = vpop.f32.mrf.mxu2 }
 0x28e   :  { %v1184_v63 = vmul.f32 %v1148_v40, %v2798_v50  ;;  %v337_v40 = vsel %vm334_vm3, %v336_v33, %v332_v19  ;;  %v347_v3 = vsel %vm2861_vm4, %v2808_v1, %v343_v27  ;;  %v362_v1 = vsel %vm2877_vm5, %v2819_v35, %v358_v37 }
 0x28f   :  { %vm390_vm3 = vweird.f32 %v2869_v16  ;;  %v395_v37 = vand.u32 2147483648, %v2844_v13 }
 0x290   :  { %v1203_v21 = vadd.f32 %v2741_v34, %v1184_v63  ;;  %v2848_v63 = vsel %vm238_vm15, %v337_v40, 0.0  ;;  %v2884_v40 = vpop.xlane.xlu2 %173  ;;  %vm2927_vm13 = vmor %vm389_vm0, %vm390_vm3 }
 0x291   :  { %1836 = vrcp.f32 %v2884_v40  ;;  %vm404_vm11 = vweird.f32 %v2884_v40  ;;  %vm243_vm6 = vcmp.gt.f32.partialorder %v2884_v40, 0.0 }
 0x292   :  { %v1219_v45 = vmax.f32 %v1203_v21, 0.0  ;;  %v348_v21 = vand.u32 2147483647, %v2784_v22 }
 0x294   :  { %v1233_v30 = vpack.c.bf16 %v1219_v45, %v1218_v46  ;;  %v365_v45 = vand.u32 2147483648, %v2793_v14  ;;  %vm349_vm12 = vcmp.eq.f32.partialorder %v348_v21, 8.507059e+37  ;;  %v380_v21 = vand.u32 2147483648, %v2834_v8 }
 0x295   :  { %v1151_v32 = vpop.f32.mrf.mxu2  ;;  %v352_v19 = vsel %vm349_vm12, %v351_v28, %v347_v3  ;;  %v410_v28 = vand.u32 2147483648, %v2884_v40 }
 0x296   :  { %1318 = vmatmul.bf16.gmra.mxu3 %v1233_v30  ;;  %v1185_v58 = vmul.f32 %v1151_v32, %v2839_v60  ;;  %v370_v30 = vmul.f32 %v2858_v12, %v2834_v8  ;;  %v363_v32 = vand.u32 2147483647, %v2793_v14  ;;  %v366_v61 = vor.u32 1.1754944e-38, %v365_v45 }
 0x297   :  { %v2889_v31 = vsel %vm239_vm1, %v352_v19, 0.0  ;;  %v378_v45 = vand.u32 2147483647, %v2834_v8  ;;  %v393_v19 = vand.u32 2147483647, %v2844_v13 }
 0x298   :  { %v1204_v20 = vadd.f32 %v2741_v34, %v1185_v58  ;;  %v371_v58 = vsub.f32 1.0, %v370_v30  ;;  %vm364_vm8 = vcmp.eq.f32.partialorder %v363_v32, 8.507059e+37  ;;  %v381_v32 = vor.u32 1.1754944e-38, %v380_v21 }
 0x299   :  { %v367_v22 = vsel %vm364_vm8, %v366_v61, %v362_v1  ;;  %vm379_vm15 = vcmp.eq.f32.partialorder %v378_v45, 8.507059e+37  ;;  %vm394_vm4 = vcmp.eq.f32.partialorder %v393_v19, 8.507059e+37 }
 0x29a   :  { %v1220_v57 = vmax.f32 %v1204_v20, 0.0  ;;  %v372_v39 = vmul.f32 %v2858_v12, %v371_v58  ;;  %v2898_v56 = vsel %vm240_vm10, %v367_v22, 0.0  ;;  %v396_v22 = vor.u32 1.1754944e-38, %v395_v37 }
 0x29c   :  { %v373_v46 = vadd.f32 %v2858_v12, %v372_v39 }
 0x29d   :  { %v1153_v55 = vpop.f32.mrf.mxu2 }
 0x29e   :  { %v1186_v5 = vmul.f32 %v1153_v55, %v2848_v63  ;;  %v386_v55 = vsub.f32 1.0, %v385_v54  ;;  %v377_v54 = vsel %vm2911_vm7, %v2858_v12, %v373_v46 }
 0x2a0   :  { %v1205_v29 = vadd.f32 %v2741_v34, %v1186_v5  ;;  %v2893_v5 = vpop.xlane.xlu0 %175 }
 0x2a1   :  { %1838 = vrcp.f32 %v2893_v5  ;;  %vm419_vm1 = vweird.f32 %v2893_v5  ;;  %vm244_vm0 = vcmp.gt.f32.partialorder %v2893_v5, 0.0 }
 0x2a2   :  { %v1221_v15 = vmax.f32 %v1205_v29, 0.0  ;;  %v387_v29 = vmul.f32 %v2869_v16, %v386_v55 }
 0x2a4   :  { %v1234_v51 = vpack.c.bf16 %v1221_v15, %v1220_v57  ;;  %v2908_v57 = vpop.eup %1836 }
 0x2a5   :  { %v1156_v33 = vpop.f32.mrf.mxu2  ;;  %vm405_vm12 = vweird.f32 %v2908_v57 }
 0x2a6   :  { %1323 = vmatmul.bf16.gmra.mxu3 %v1234_v51  ;;  %v1187_v20 = vmul.f32 %v1156_v33, %v2889_v31  ;;  %v388_v51 = vadd.f32 %v2869_v16, %v387_v29  ;;  %v400_v33 = vmul.f32 %v2908_v57, %v2884_v40  ;;  %vm2961_vm5 = vmor %vm404_vm11, %vm405_vm12 }
 0x2a7   :  { %v2919_v41 = vpop.eup %1838 }
 0x2a8   :  { %v1206_v14 = vadd.f32 %v2741_v34, %v1187_v20  ;;  %v415_v55 = vmul.f32 %v2919_v41, %v2893_v5  ;;  %v382_v20 = vsel %vm379_vm15, %v381_v32, %v377_v54  ;;  %v401_v39 = vsub.f32 1.0, %v400_v33 }
 0x2a9   :  { %v392_v12 = vsel %vm2927_vm13, %v2869_v16, %v388_v51  ;;  %vm420_vm8 = vweird.f32 %v2919_v41  ;;  %v425_v54 = vand.u32 2147483648, %v2893_v5 }
 0x2aa   :  { %v1222_v30 = vmax.f32 %v1206_v14, 0.0  ;;  %v2939_v14 = vsel %vm241_vm2, %v382_v20, 0.0  ;;  %v416_v21 = vsub.f32 1.0, %v415_v55  ;;  %v397_v29 = vsel %vm394_vm4, %v396_v22, %v392_v12  ;;  %vm2977_vm14 = vmor %vm419_vm1, %vm420_vm8 }
 0x2ab   :  { %v402_v46 = vmul.f32 %v2908_v57, %v401_v39  ;;  %v2948_v45 = vsel %vm242_vm9, %v397_v29, 0.0  ;;  %v423_v39 = vand.u32 2147483647, %v2893_v5 }
 0x2ac   :  { %v417_v37 = vmul.f32 %v2919_v41, %v416_v21 }
 0x2ad   :  { %v1158_v35 = vpop.f32.mrf.mxu2  ;;  %vm424_vm7 = vcmp.eq.f32.partialorder %v423_v39, 8.507059e+37 }
 0x2ae   :  { %v1188_v27 = vmul.f32 %v1158_v35, %v2898_v56  ;;  %v2934_v35 = vpop.xlane.xlu1 %177  ;;  %v418_v55 = vadd.f32 %v2919_v41, %v417_v37 }
 0x2af   :  { %1840 = vrcp.f32 %v2934_v35  ;;  %vm434_vm3 = vweird.f32 %v2934_v35  ;;  %vm245_vm12 = vcmp.gt.f32.partialorder %v2934_v35, 0.0 }
 0x2b0   :  { %v1207_v15 = vadd.f32 %v2741_v34, %v1188_v27  ;;  %v2941_v27 = vpop.xlane.xlu2 %179 }
 0x2b1   :  { %1842 = vrcp.f32 %v2941_v27  ;;  %vm449_vm2 = vweird.f32 %v2941_v27  ;;  %vm246_vm1 = vcmp.gt.f32.partialorder %v2941_v27, 0.0 }
 0x2b2   :  { %v1223_v3 = vmax.f32 %v1207_v15, 0.0 }
 0x2b4   :  { %v1235_v61 = vpack.c.bf16 %v1223_v3, %v1222_v30  ;;  %v403_v30 = vadd.f32 %v2908_v57, %v402_v46  ;;  %v408_v3 = vand.u32 2147483647, %v2884_v40 }
 0x2b5   :  { %v1161_v1 = vpop.f32.mrf.mxu2  ;;  %v2958_v32 = vpop.eup %1840 }
 0x2b6   :  { %1328 = vmatmul.bf16.gmra.mxu3 %v1235_v61  ;;  %v1189_v8 = vmul.f32 %v1161_v1, %v2939_v14  ;;  %v411_v1 = vor.u32 1.1754944e-38, %v410_v28  ;;  %v430_v20 = vmul.f32 %v2958_v32, %v2934_v35  ;;  %v407_v22 = vsel %vm2961_vm5, %v2908_v57, %v403_v30 }
 0x2b7   :  { %v2968_v19 = vpop.eup %1842  ;;  %vm409_vm10 = vcmp.eq.f32.partialorder %v408_v3, 8.507059e+37  ;;  %v422_v57 = vsel %vm2977_vm14, %v2919_v41, %v418_v55  ;;  %v2994_v3 = vpop.xlane.xlu1 %183  ;;  %vm435_vm15 = vweird.f32 %v2958_v32  ;;  %v438_v55 = vand.u32 2147483647, %v2934_v35 }
 0x2b8   :  { %v1208_v15 = vadd.f32 %v2741_v34, %v1189_v8  ;;  %v445_v8 = vmul.f32 %v2968_v19, %v2941_v27  ;;  %v412_v46 = vsel %vm409_vm10, %v411_v1, %v407_v22  ;;  %vm3009_vm13 = vmor %vm434_vm3, %vm435_vm15  ;;  %vm450_vm4 = vweird.f32 %v2968_v19 }
 0x2b9   :  { %v2989_v37 = vsel %vm243_vm6, %v412_v46, 0.0  ;;  %vm439_vm9 = vcmp.eq.f32.partialorder %v438_v55, 8.507059e+37  ;;  %vm451_vm11 = vmor %vm449_vm2, %vm450_vm4  ;;  %vm479_vm6 = vweird.f32 %v2994_v3  ;;  %vm248_vm2 = vcmp.gt.f32.partialorder %v2994_v3, 0.0 }
 0x2ba   :  { %v1224_v61 = vmax.f32 %v1208_v15, 0.0  ;;  %v431_v15 = vsub.f32 1.0, %v430_v20  ;;  %v446_v28 = vsub.f32 1.0, %v445_v8 }
 0x2bc   :  { %v447_v33 = vmul.f32 %v2968_v19, %v446_v28 }
 0x2bd   :  { %v1163_v16 = vpop.f32.mrf.mxu2 }
 0x2be   :  { %v1190_v13 = vmul.f32 %v1163_v16, %v2948_v45  ;;  %v426_v16 = vor.u32 1.1754944e-38, %v425_v54  ;;  %v448_v46 = vadd.f32 %v2968_v19, %v447_v33 }
 0x2c0   :  { %v1209_v51 = vadd.f32 %v2741_v34, %v1190_v13  ;;  %v2984_v13 = vpop.xlane.xlu0 %181  ;;  %v427_v40 = vsel %vm424_vm7, %v426_v16, %v422_v57  ;;  %v453_v57 = vand.u32 2147483647, %v2941_v27 }
 0x2c1   :  { %1844 = vrcp.f32 %v2984_v13  ;;  %v2998_v54 = vsel %vm244_vm0, %v427_v40, 0.0  ;;  %vm464_vm8 = vweird.f32 %v2984_v13  ;;  %vm247_vm15 = vcmp.gt.f32.partialorder %v2984_v13, 0.0 }
 0x2c2   :  { %v1225_v58 = vmax.f32 %v1209_v51, 0.0  ;;  %v432_v51 = vmul.f32 %v2958_v32, %v431_v15  ;;  %1846 = vrcp.f32 %v2994_v3  ;;  %vm454_vm5 = vcmp.eq.f32.partialorder %v453_v57, 8.507059e+37 }
 0x2c4   :  { %v1236_v12 = vpack.c.bf16 %v1225_v58, %v1224_v61  ;;  %v440_v58 = vand.u32 2147483648, %v2934_v35  ;;  %v433_v1 = vadd.f32 %v2958_v32, %v432_v51 }
 0x2c5   :  { %v1166_v29 = vpop.f32.mrf.mxu2 }
 0x2c6   :  { %1333 = vmatmul.bf16.gmra.mxu3 %v1236_v12  ;;  %v1191_v30 = vmul.f32 %v1166_v29, %v2989_v37  ;;  %v455_v12 = vand.u32 2147483648, %v2941_v27  ;;  %v441_v29 = vor.u32 1.1754944e-38, %v440_v58  ;;  %v437_v15 = vsel %vm3009_vm13, %v2958_v32, %v433_v1 }
 0x2c7   :  { %v1845_v20 = vpop.eup %1844 }
 0x2c8   :  { %v1210_v61 = vadd.f32 %v2741_v34, %v1191_v30  ;;  %v460_v16 = vmul.f32 %v1845_v20, %v2984_v13  ;;  %v1847_v28 = vpop.eup %1846  ;;  %v442_v51 = vsel %vm439_vm9, %v441_v29, %v437_v15  ;;  %vm465_vm10 = vweird.f32 %v1845_v20 }
 0x2c9   :  { %v475_v33 = vmul.f32 %v1847_v28, %v2994_v3  ;;  %v3025_v58 = vsel %vm245_vm12, %v442_v51, 0.0  ;;  %vm3037_vm14 = vmor %vm464_vm8, %vm465_vm10  ;;  %vm480_vm7 = vweird.f32 %v1847_v28 }
 0x2ca   :  { %v1226_v21 = vmax.f32 %v1210_v61, 0.0  ;;  %v461_v61 = vsub.f32 1.0, %v460_v16  ;;  %vm481_vm3 = vmor %vm479_vm6, %vm480_vm7 }
 0x2cc   :  { %v462_v55 = vmul.f32 %v1845_v20, %v461_v61  ;;  %v483_v61 = vand.u32 2147483647, %v2994_v3 }
 0x2cd   :  { %v1168_v41 = vpop.f32.mrf.mxu2 }
 0x2ce   :  { %v1192_v5 = vmul.f32 %v1168_v41, %v2998_v54  ;;  %v456_v41 = vor.u32 1.1754944e-38, %v455_v12  ;;  %v463_v29 = vadd.f32 %v1845_v20, %v462_v55  ;;  %vm484_vm13 = vcmp.eq.f32.partialorder %v483_v61, 8.507059e+37 }
 0x2d0   :  { %v1211_v22 = vadd.f32 %v2741_v34, %v1192_v5  ;;  %v452_v5 = vsel %vm451_vm11, %v2968_v19, %v448_v46  ;;  %v468_v46 = vand.u32 2147483647, %v2984_v13  ;;  %v467_v51 = vsel %vm3037_vm14, %v1845_v20, %v463_v29 }
 0x2d1   :  { %v457_v1 = vsel %vm454_vm5, %v456_v41, %v452_v5 }
 0x2d2   :  { %v1227_v8 = vmax.f32 %v1211_v22, 0.0  ;;  %v476_v22 = vsub.f32 1.0, %v475_v33  ;;  %v3029_v39 = vsel %vm246_vm1, %v457_v1, 0.0  ;;  %vm469_vm0 = vcmp.eq.f32.partialorder %v468_v46, 8.507059e+37 }
 0x2d4   :  { %v1237_v30 = vpack.c.bf16 %v1227_v8, %v1226_v21  ;;  %v470_v21 = vand.u32 2147483648, %v2984_v13  ;;  %v477_v8 = vmul.f32 %v1847_v28, %v476_v22 }
 0x2d5   :  { %v1171_v40 = vpop.f32.mrf.mxu2 }
 0x2d6   :  { %1338 = vmatmul.bf16.gmra.mxu3 %v1237_v30  ;;  %v1193_v32 = vmul.f32 %v1171_v40, %v3025_v58  ;;  %v471_v30 = vor.u32 1.1754944e-38, %v470_v21  ;;  %v485_v40 = vand.u32 2147483648, %v2994_v3  ;;  %v478_v41 = vadd.f32 %v1847_v28, %v477_v8 }
 0x2d8   :  { %v1212_v12 = vadd.f32 %v2741_v34, %v1193_v32  ;;  %v472_v32 = vsel %vm469_vm0, %v471_v30, %v467_v51  ;;  %v486_v1 = vor.u32 1.1754944e-38, %v485_v40  ;;  %v482_v55 = vsel %vm481_vm3, %v1847_v28, %v478_v41 }
 0x2d9   :  { %v3047_v22 = vsel %vm247_vm15, %v472_v32, 0.0 }
 0x2da   :  { %v1228_v15 = vmax.f32 %v1212_v12, 0.0  ;;  %v487_v20 = vsel %vm484_vm13, %v486_v1, %v482_v55 }
 0x2db   :  { %v3051_v12 = vsel %vm248_vm2, %v487_v20, 0.0 }
 0x2dd   :  { %v1173_v35 = vpop.f32.mrf.mxu2 }
 0x2de   :  { %v1194_v19 = vmul.f32 %v1173_v35, %v3029_v39 }
 0x2e0   :  { %v1213_v27 = vadd.f32 %v2741_v34, %v1194_v19 }
 0x2e2   :  { %v1229_v57 = vmax.f32 %v1213_v27, 0.0 }
 0x2e4   :  { %v1238_v33 = vpack.c.bf16 %v1229_v57, %v1228_v15 }
 0x2e5   :  { %v1176_v5 = vpop.f32.mrf.mxu2 }
 0x2e6   :  { %1343 = vmatmul.bf16.gmra.mxu3 %v1238_v33  ;;  %v1195_v35 = vmul.f32 %v1176_v5, %v3047_v22 }
 0x2e8   :  { %v1214_v21 = vadd.f32 %v2741_v34, %v1195_v35 }
 0x2ea   :  { %v1230_v29 = vmax.f32 %v1214_v21, 0.0 }
 0x2ed   :  { %v1178_v19 = vpop.f32.mrf.mxu2 }
 0x2ee   :  { %v1196_v8 = vmul.f32 %v1178_v19, %v3051_v12 }
 0x2f0   :  { %v1215_v13 = vadd.f32 %v2741_v34, %v1196_v8 }
 0x2f2   :  { %v1231_v46 = vmax.f32 %v1215_v13, 0.0 }
 0x2f4   :  { %v1239_v28 = vpack.c.bf16 %v1231_v46, %v1230_v29 }
 0x2f6   :  { %1348 = vmatmul.bf16.gmra.mxu3 %v1239_v28  ;;  %v1848_v28 = vld [vmem:[#allocation7] sm:$0xff] }
 0x309   :  { %v1314_v27 = vpop.f32.mrf.mxu3 }
 0x311   :  { %v1316_v16 = vpop.f32.mrf.mxu3 }
 0x312   :  { %v1354_v15 = vpack.c.bf16 %v1316_v16, %v1314_v27  ;;  %v1849_v27 = vld [vmem:[#allocation7 + $0x8] sm:$0xff]  ;;  %v1850_v16 = vld [vmem:[#allocation7 + $0x10] sm:$0xff] }
 0x319   :  { %v1319_v57 = vpop.f32.mrf.mxu3 }
 0x321   :  { %v1321_v30 = vpop.f32.mrf.mxu3 }
 0x322   :  { %v1355_v3 = vpack.c.bf16 %v1321_v30, %v1319_v57  ;;  %v1851_v57 = vld [vmem:[#allocation7 + $0x18] sm:$0xff]  ;;  %v1852_v30 = vld [vmem:[#allocation7 + $0x20] sm:$0xff] }
 0x329   :  { %v1324_v40 = vpop.f32.mrf.mxu3 }
 0x331   :  { %v1326_v51 = vpop.f32.mrf.mxu3 }
 0x332   :  { %v1356_v41 = vpack.c.bf16 %v1326_v51, %v1324_v40  ;;  %v1853_v40 = vld [vmem:[#allocation7 + $0x28] sm:$0xff]  ;;  %v1854_v51 = vld [vmem:[#allocation7 + $0x30] sm:$0xff] }
 0x339   :  { %v1329_v61 = vpop.f32.mrf.mxu3 }
 0x341   :  { %v1331_v33 = vpop.f32.mrf.mxu3 }
 0x342   :  { %v1357_v5 = vpack.c.bf16 %v1331_v33, %v1329_v61  ;;  %v1855_v61 = vld [vmem:[#allocation7 + $0x38] sm:$0xff] }
 0x349   :  { %v1334_v32 = vpop.f32.mrf.mxu3 }
 0x351   :  { %v1336_v1 = vpop.f32.mrf.mxu3 }
 0x352   :  { %v1358_v46 = vpack.c.bf16 %v1336_v1, %v1334_v32 }
 0x359   :  { %v1339_v55 = vpop.f32.mrf.mxu3 }
 0x361   :  { %v1341_v34 = vpop.f32.mrf.mxu3 }
 0x362   :  { %v1359_v29 = vpack.c.bf16 %v1341_v34, %v1339_v55 }
 0x369   :  { %v1344_v35 = vpop.f32.mrf.mxu3 }
 0x371   :  { %v1346_v20 = vpop.f32.mrf.mxu3 }
 0x372   :  { %v1360_v13 = vpack.c.bf16 %v1346_v20, %v1344_v35 }
 0x379   :  { %v1349_v19 = vpop.f32.mrf.mxu3 }
 0x381   :  { %v1351_v21 = vpop.f32.mrf.mxu3 }
 0x382   :  { %v1361_v8 = vpack.c.bf16 %v1351_v21, %v1349_v19 }
 0x384   :  { %1362 = vmatpush.bf16.msrb.mxu0 %v1361_v8 }
 0x388   :  { %1363 = vmatpush.bf16.msrb.mxu0 %v1360_v13 }
 0x38c   :  { %1364 = vmatpush.bf16.msrb.mxu0 %v1359_v29 }
 0x390   :  { %1365 = vmatpush.bf16.msrb.mxu0 %v1358_v46 }
 0x394   :  { %1366 = vmatpush.bf16.msrb.mxu0 %v1357_v5 }
 0x398   :  { %1367 = vmatpush.bf16.msrb.mxu0 %v1356_v41 }
 0x39c   :  { %1368 = vmatpush.bf16.msrb.mxu0 %v1355_v3 }
 0x3a0   :  { %1369 = vmatpush.bf16.msrb.mxu0 %v1354_v15 }
 0x3a3   :  { %1370 = vmatmul.bf16.vlgmr.msrb.gmra.mxu0 %v1848_v28 }
 0x3b3   :  { %1375 = vmatmul.bf16.gmra.mxu0 %v1849_v27 }
 0x3c3   :  { %1380 = vmatmul.bf16.gmra.mxu0 %v1850_v16 }
 0x3d3   :  { %1385 = vmatmul.bf16.gmra.mxu0 %v1851_v57 }
 0x3e3   :  { %1390 = vmatmul.bf16.gmra.mxu0 %v1852_v30 }
 0x3f3   :  { %1395 = vmatmul.bf16.gmra.mxu0 %v1853_v40 }
 0x403   :  { %1400 = vmatmul.bf16.gmra.mxu0 %v1854_v51 }
 0x413   :  { %1405 = vmatmul.bf16.gmra.mxu0 %v1855_v61 }
 0x420   :  { %v1371_v33 = vpop.f32.mrf.mxu0 }
 0x421   :  { %v1411_v15 = vmul.f32 %v1371_v33, %v2680_v42 }
 0x428   :  { %v1373_v41 = vpop.f32.mrf.mxu0 }
 0x429   :  { %v1412_v3 = vmul.f32 %v1373_v41, %v2678_v47 }
 0x42b   :  { %v1427_v5 = vpack.c.bf16 %v1412_v3, %v1411_v15 }
 0x430   :  { %v1376_v32 = vpop.f32.mrf.mxu0 }
 0x431   :  { %v1413_v55 = vmul.f32 %v1376_v32, %v2668_v59 }
 0x438   :  { %v1378_v1 = vpop.f32.mrf.mxu0 }
 0x439   :  { %v1414_v34 = vmul.f32 %v1378_v1, %v2670_v48 }
 0x43b   :  { %v1428_v35 = vpack.c.bf16 %v1414_v34, %v1413_v55 }
 0x440   :  { %v1381_v20 = vpop.f32.mrf.mxu0 }
 0x441   :  { %v1415_v21 = vmul.f32 %v1381_v20, %v2637_v49 }
 0x448   :  { %v1383_v19 = vpop.f32.mrf.mxu0 }
 0x449   :  { %v1416_v8 = vmul.f32 %v1383_v19, %v2641_v36 }
 0x44b   :  { %v1429_v13 = vpack.c.bf16 %v1416_v8, %v1415_v21 }
 0x450   :  { %v1386_v29 = vpop.f32.mrf.mxu0 }
 0x451   :  { %v1417_v42 = vmul.f32 %v1386_v29, %v2598_v6 }
 0x458   :  { %v1388_v46 = vpop.f32.mrf.mxu0 }
 0x459   :  { %v1418_v47 = vmul.f32 %v1388_v46, %v2600_v25 }
 0x45b   :  { %v1430_v28 = vpack.c.bf16 %v1418_v47, %v1417_v42 }
 0x460   :  { %v1391_v27 = vpop.f32.mrf.mxu0 }
 0x461   :  { %v1419_v1 = vmul.f32 %v1391_v27, %v2259_v53  ;;  %v3082_v53 = vld [vmem:[%s3125_s6] ss:$0 sm:$0xff]  ;;  %s2016_s6 = smov [#allocation11]  }
 0x462   :  { %s1539_s26 = sshll.u32 %s2016_s6, 4  ;;  %s1540_s26 = int_to_ptr.vmem [resolvable:$true] %s1539_s26 }
 0x468   :  { %v1393_v16 = vpop.f32.mrf.mxu0 }
 0x469   :  { %v1420_v3 = vmul.f32 %v1393_v16, %v2314_v43 }
 0x470   :  { %v1396_v59 = vpop.f32.mrf.mxu0 }
 0x471   :  { %v1421_v15 = vmul.f32 %v1396_v59, %v2395_v2 }
 0x478   :  { %v1398_v57 = vpop.f32.mrf.mxu0 }
 0x479   :  { %v1422_v25 = vmul.f32 %v1398_v57, %v2451_v7 }
 0x47b   :  { %v1432_v32 = vpack.c.bf16 %v1422_v25, %v1421_v15 }
 0x480   :  { %v1401_v48 = vpop.f32.mrf.mxu0 }
 0x481   :  { %v1423_v6 = vmul.f32 %v1401_v48, %v2480_v38  ;;  %v1856_v38 = vld [vmem:[#allocation5] sm:$0xff] }
 0x488   :  { %v1403_v30 = vpop.f32.mrf.mxu0 }
 0x489   :  { %v1424_v61 = vmul.f32 %v1403_v30, %v2487_v44 }
 0x48b   :  { %v1433_v41 = vpack.c.bf16 %v1424_v61, %v1423_v6 }
 0x490   :  { %v1406_v40 = vpop.f32.mrf.mxu0 }
 0x491   :  { %v1425_v49 = vmul.f32 %v1406_v40, %v2484_v9  ;;  %v1431_v9 = vpack.c.bf16 %v1420_v3, %v1419_v1 }
 0x498   :  { %v1408_v51 = vpop.f32.mrf.mxu0 }
 0x499   :  { %v1426_v36 = vmul.f32 %v1408_v51, %v2491_v0 }
 0x49b   :  { %v1434_v33 = vpack.c.bf16 %v1426_v36, %v1425_v49 }
 0x49d   :  { %1435 = vmatpush.bf16.msrb.mxu1 %v1434_v33 }
 0x4a1   :  { %1436 = vmatpush.bf16.msrb.mxu1 %v1433_v41 }
 0x4a5   :  { %1437 = vmatpush.bf16.msrb.mxu1 %v1432_v32 }
 0x4a9   :  { %1438 = vmatpush.bf16.msrb.mxu1 %v1431_v9 }
 0x4ad   :  { %1439 = vmatpush.bf16.msrb.mxu1 %v1430_v28 }
 0x4b1   :  { %1440 = vmatpush.bf16.msrb.mxu1 %v1429_v13 }
 0x4b5   :  { %1441 = vmatpush.bf16.msrb.mxu1 %v1428_v35 }
 0x4b9   :  { %1442 = vmatpush.bf16.msrb.mxu1 %v1427_v5 }
 0x4bc   :  { %1443 = vmatmul.bf16.vlgmr.msrb.gmra.mxu1 %v1856_v38 }
 0x4cc   :  { %1448 = vmatmul.bf16.gmra.mxu1 %v2686_v52 }
 0x4dc   :  { %1453 = vmatmul.bf16.gmra.mxu1 %v2689_v18 }
 0x4ec   :  { %1458 = vmatmul.bf16.gmra.mxu1 %v2692_v17 }
 0x4fc   :  { %1463 = vmatmul.bf16.gmra.mxu1 %v2695_v26 }
 0x50c   :  { %1468 = vmatmul.bf16.gmra.mxu1 %v2698_v24 }
 0x51c   :  { %1473 = vmatmul.bf16.gmra.mxu1 %v2701_v23 }
 0x52c   :  { %1478 = vmatmul.bf16.gmra.mxu1 %v2704_v4 }
 0x539   :  { %v1444_v2 = vpop.f32.mrf.mxu1 }
 0x53a   :  { %v1484_v43 = vmul.f32 %v1444_v2, %v2735_v62 }
 0x53c   :  { %v1503_v7 = vadd.f32 %v3082_v53, %v1484_v43 }
 0x53e   :  { %1519 = vst [vmem:[#allocation11] sm:$0xff] %v1503_v7 }
 0x541   :  { %v1446_v44 = vpop.f32.mrf.mxu1 }
 0x542   :  { %v1485_v0 = vmul.f32 %v1446_v44, %v2748_v10 }
 0x544   :  { %v1504_v52 = vadd.f32 %v3082_v53, %v1485_v0 }
 0x546   :  { %1520 = vst [vmem:[#allocation11 + $0x8] sm:$0xff] %v1504_v52 }
 0x549   :  { %v1449_v18 = vpop.f32.mrf.mxu1 }
 0x54a   :  { %v1486_v17 = vmul.f32 %v1449_v18, %v2789_v11 }
 0x54c   :  { %v1505_v26 = vadd.f32 %v3082_v53, %v1486_v17 }
 0x54e   :  { %1521 = vst [vmem:[#allocation11 + $0x10] sm:$0xff] %v1505_v26 }
 0x551   :  { %v1451_v24 = vpop.f32.mrf.mxu1 }
 0x552   :  { %v1487_v23 = vmul.f32 %v1451_v24, %v2798_v50 }
 0x554   :  { %v1506_v4 = vadd.f32 %v3082_v53, %v1487_v23 }
 0x556   :  { %1522 = vst [vmem:[#allocation11 + $0x18] sm:$0xff] %v1506_v4 }
 0x559   :  { %v1454_v62 = vpop.f32.mrf.mxu1 }
 0x55a   :  { %v1488_v5 = vmul.f32 %v1454_v62, %v2839_v60 }
 0x55c   :  { %v1507_v10 = vadd.f32 %v3082_v53, %v1488_v5 }
 0x55e   :  { %1523 = vst [vmem:[#allocation11 + $0x20] sm:$0xff] %v1507_v10 }
 0x561   :  { %v1456_v55 = vpop.f32.mrf.mxu1 }
 0x562   :  { %v1489_v34 = vmul.f32 %v1456_v55, %v2848_v63 }
 0x564   :  { %v1508_v11 = vadd.f32 %v3082_v53, %v1489_v34 }
 0x566   :  { %1524 = vst [vmem:[#allocation11 + $0x28] sm:$0xff] %v1508_v11 }
 0x569   :  { %v1459_v35 = vpop.f32.mrf.mxu1 }
 0x56a   :  { %v1490_v20 = vmul.f32 %v1459_v35, %v2889_v31 }
 0x56c   :  { %v1509_v50 = vadd.f32 %v3082_v53, %v1490_v20 }
 0x56e   :  { %1525 = vst [vmem:[#allocation11 + $0x30] sm:$0xff] %v1509_v50 }
 0x571   :  { %v1461_v19 = vpop.f32.mrf.mxu1 }
 0x572   :  { %v1491_v21 = vmul.f32 %v1461_v19, %v2898_v56 }
 0x574   :  { %v1510_v60 = vadd.f32 %v3082_v53, %v1491_v21 }
 0x576   :  { %1526 = vst [vmem:[#allocation11 + $0x38] sm:$0xff] %v1510_v60 }
 0x579   :  { %v1464_v8 = vpop.f32.mrf.mxu1 }
 0x57a   :  { %v1492_v13 = vmul.f32 %v1464_v8, %v2939_v14 }
 0x57c   :  { %v1511_v63 = vadd.f32 %v3082_v53, %v1492_v13 }
 0x57e   :  { %1527 = vst [vmem:[#allocation11 + $0x40] sm:$0xff] %v1511_v63 }
 0x581   :  { %v1466_v29 = vpop.f32.mrf.mxu1 }
 0x582   :  { %v1493_v46 = vmul.f32 %v1466_v29, %v2948_v45 }
 0x584   :  { %v1512_v31 = vadd.f32 %v3082_v53, %v1493_v46 }
 0x586   :  { %1528 = vst [vmem:[#allocation11 + $0x48] sm:$0xff] %v1512_v31 }
 0x589   :  { %v1469_v42 = vpop.f32.mrf.mxu1 }
 0x58a   :  { %v1494_v47 = vmul.f32 %v1469_v42, %v2989_v37 }
 0x58c   :  { %v1513_v56 = vadd.f32 %v3082_v53, %v1494_v47 }
 0x58e   :  { %1529 = vst [vmem:[#allocation11 + $0x50] sm:$0xff] %v1513_v56 }
 0x591   :  { %v1471_v28 = vpop.f32.mrf.mxu1 }
 0x592   :  { %v1495_v27 = vmul.f32 %v1471_v28, %v2998_v54 }
 0x594   :  { %v1514_v14 = vadd.f32 %v3082_v53, %v1495_v27 }
 0x596   :  { %1530 = vst [vmem:[#allocation11 + $0x58] sm:$0xff] %v1514_v14 }
 0x599   :  { %v1474_v16 = vpop.f32.mrf.mxu1 }
 0x59a   :  { %v1496_v59 = vmul.f32 %v1474_v16, %v3025_v58 }
 0x59c   :  { %v1515_v45 = vadd.f32 %v3082_v53, %v1496_v59 }
 0x59e   :  { %1531 = vst [vmem:[#allocation11 + $0x60] sm:$0xff] %v1515_v45 }
 0x5a1   :  { %v1476_v57 = vpop.f32.mrf.mxu1 }
 0x5a2   :  { %v1497_v48 = vmul.f32 %v1476_v57, %v3029_v39 }
 0x5a4   :  { %v1516_v37 = vadd.f32 %v3082_v53, %v1497_v48 }
 0x5a6   :  { %1532 = vst [vmem:[#allocation11 + $0x68] sm:$0xff] %v1516_v37 }
 0x5a9   :  { %v1479_v30 = vpop.f32.mrf.mxu1 }
 0x5aa   :  { %v1498_v40 = vmul.f32 %v1479_v30, %v3047_v22 }
 0x5ac   :  { %v1517_v54 = vadd.f32 %v3082_v53, %v1498_v40 }
 0x5ae   :  { %1533 = vst [vmem:[#allocation11 + $0x70] sm:$0xff] %v1517_v54 }
 0x5b1   :  { %v1481_v58 = vpop.f32.mrf.mxu1 }
 0x5b2   :  { %v1499_v51 = vmul.f32 %v1481_v58, %v3051_v12 }
 0x5b4   :  { %v1518_v39 = vadd.f32 %v3082_v53, %v1499_v51 }
 0x5b6   :  { %1534 = vst [vmem:[#allocation11 + $0x78] sm:$0xff] %v1518_v39 }
 0x5b7   :  { %1547 = dma.vmem_to_hbm [thread:$0]  %s1540_s26, 2048, %s1542_s29, [#allocation4], %s2017_s30, %s2017_s30, %s2018_s8  }
 0x5b8   :  { %2007 = dma.done.wait [#allocation4], 2048  }
 0x5b9   :  { %2008 = vsyncadd [#allocation4], 4294965248 }
 0x5ba   :  { %1552 = vsyncpa [#allocation3], 1 }
 0x5bb   :  { %1553 = vsyncpa [#allocation6], 1 }
 0x5bc   :  { %1554 = vsyncpa [#allocation9], 1 }
 0x5bd   :  { %1555 = vsyncpa [#allocation4], 1 }

</bundles_post_ra>
